<compile_context>
chip_gen: v7x
topology: tpu7x:2x2x1
jax: 0.10.0
libtpu: 0.0.40
codegen_flags: <defaults>
</compile_context>

<pallas_src>
import functools

import jax
import jax.numpy as jnp
from jax.experimental import pallas as pl
from jax.experimental.pallas import tpu as pltpu


# ----------------------------------------------------------------------------
# Pallas kernels
# ----------------------------------------------------------------------------
def _conv_matmul_kernel(x_ref, w_ref, b_ref, o_ref, *, slope):
    """One fused conv-as-matmul block: leaky_relu(patches @ W + b)."""
    acc = jnp.dot(x_ref[...], w_ref[...], preferred_element_type=jnp.float32)
    acc = acc + b_ref[...]                      # (1, OC) broadcasts over rows
    acc = jnp.where(acc >= 0, acc, slope * acc)
    o_ref[...] = acc.astype(o_ref.dtype)


def _tail_kernel(p4_ref, w4_ref, b4_ref, w1_ref, b1_ref, w2_ref, b2_ref, o_ref,
                 *, batch, n_pos):
    """Fused conv4 + LeakyReLU(0.2) + fc1 + LeakyReLU(0.01) + fc2.

    p4_ref rows are position-major: row = p * batch + b with p = oh*OW + ow,
    so per-tap row groups are contiguous sublane slices (no strided access).
    """
    h4 = jnp.dot(p4_ref[...], w4_ref[...], preferred_element_type=jnp.float32)
    h4 = h4 + b4_ref[...]
    h4 = jnp.where(h4 >= 0, h4, 0.2 * h4)       # (n_pos*batch, 64)

    c4 = w4_ref.shape[1]                        # 64 channels of conv4
    nf = w1_ref.shape[1]                        # 32 fc1 features
    # fc1 as a sum over the 4 spatial positions -> avoids any in-kernel
    # reshape/transpose of the flatten; w1 rows are ordered (p, c).
    acc = jnp.zeros((batch, nf), jnp.float32)
    for p in range(n_pos):
        acc = acc + jnp.dot(h4[p * batch:(p + 1) * batch, :],
                            w1_ref[p * c4:(p + 1) * c4, :],
                            preferred_element_type=jnp.float32)
    h1 = acc + b1_ref[...]
    h1 = jnp.where(h1 >= 0, h1, 0.01 * h1)
    # TODO(synk): Dropout(p=0.5) is identity at inference; training-mode mask
    # (random keep + 1/(1-p) scaling) is not applied.
    out = jnp.dot(h1, w2_ref[...], preferred_element_type=jnp.float32) + b2_ref[...]
    o_ref[...] = out.astype(o_ref.dtype)


# ----------------------------------------------------------------------------
# Pallas call wrappers
# ----------------------------------------------------------------------------
def conv_matmul(x, w, b, *, slope, m_split=1):
    """leaky_relu(x @ w + b) with x:(M,K), w:(K,OC), b:(OC,)."""
    M, K = x.shape
    _, N = w.shape
    b2 = b.reshape(1, N)
    kernel = functools.partial(_conv_matmul_kernel, slope=slope)

    if m_split == 1:
        return pl.pallas_call(
            kernel,
            out_shape=jax.ShapeDtypeStruct((M, N), jnp.float32),
            in_specs=[pl.BlockSpec((M, K), lambda: (0, 0)),
                      pl.BlockSpec((K, N), lambda: (0, 0)),
                      pl.BlockSpec((1, N), lambda: (0, 0))],
            out_specs=pl.BlockSpec((M, N), lambda: (0, 0)),
        )(x, w, b2)

    tm = M // m_split
    return pl.pallas_call(
        kernel,
        out_shape=jax.ShapeDtypeStruct((M, N), jnp.float32),
        grid=(m_split,),
        in_specs=[pl.BlockSpec((tm, K), lambda i: (i, 0)),
                  pl.BlockSpec((K, N), lambda i: (0, 0)),
                  pl.BlockSpec((1, N), lambda i: (0, 0))],
        out_specs=pl.BlockSpec((tm, N), lambda i: (i, 0)),
        compiler_params=pltpu.CompilerParams(
            dimension_semantics=("parallel",)),   # shard M across TCs on v7x
    )(x, w, b2)


def tail_fused(p4, w4, b4, w1, b1, w2, b2, *, batch):
    """Single pallas_call for conv4 + fc1 + fc2 (position-major p4 rows)."""
    M, K = p4.shape
    n_pos = M // batch
    n_out = w2.shape[1]
    kernel = functools.partial(_tail_kernel, batch=batch, n_pos=n_pos)
    return pl.pallas_call(
        kernel,
        out_shape=jax.ShapeDtypeStruct((batch, n_out), jnp.float32),
        in_specs=[pl.BlockSpec((M, K), lambda: (0, 0)),
                  pl.BlockSpec(w4.shape, lambda: (0, 0)),
                  pl.BlockSpec((1, w4.shape[1]), lambda: (0, 0)),
                  pl.BlockSpec(w1.shape, lambda: (0, 0)),
                  pl.BlockSpec((1, w1.shape[1]), lambda: (0, 0)),
                  pl.BlockSpec(w2.shape, lambda: (0, 0)),
                  pl.BlockSpec((1, w2.shape[1]), lambda: (0, 0))],
        out_specs=pl.BlockSpec((batch, n_out), lambda: (0, 0)),
    )(p4, w4, b4.reshape(1, -1), w1, b1.reshape(1, -1), w2, b2.reshape(1, -1))


# ----------------------------------------------------------------------------
# im2col glue (plain JAX, NHWC, no big transposes): 16 strided slices + concat
# ----------------------------------------------------------------------------
def im2col_nhwc(x, k=4, stride=2, pad=1):
    """NHWC input -> (B, OH, OW, k*k*C) patches, last axis ordered (kh, kw, c)."""
    B, H, W, C = x.shape
    xp = jnp.pad(x, ((0, 0), (pad, pad), (pad, pad), (0, 0)))
    OH = (H + 2 * pad - k) // stride + 1
    OW = (W + 2 * pad - k) // stride + 1
    cols = []
    for kh in range(k):
        for kw in range(k):
            cols.append(xp[:, kh:kh + stride * OH:stride,
                              kw:kw + stride * OW:stride, :])
    return jnp.concatenate(cols, axis=-1)


# ----------------------------------------------------------------------------
# Parameter construction: torch-like init, BN folded + weights pre-reordered
# ----------------------------------------------------------------------------
def make_params(key, eps=1e-5):
    def uniform(key, shape, fan_in):
        bound = 1.0 / jnp.sqrt(float(fan_in))
        return jax.random.uniform(key, shape, jnp.float32, -bound, bound)

    conv_cfgs = [(3, 8), (8, 16), (16, 32), (32, 64)]
    keys = jax.random.split(key, 2 * len(conv_cfgs) + 4)
    ki = 0
    params = {}
    for li, (cin, cout) in enumerate(conv_cfgs, start=1):
        fan_in = cin * 4 * 4
        w = uniform(keys[ki], (cout, cin, 4, 4), fan_in); ki += 1
        b = uniform(keys[ki], (cout,), fan_in); ki += 1
        # Freshly-initialized BatchNorm2d in eval mode, folded into conv.
        gamma = jnp.ones((cout,), jnp.float32)
        beta = jnp.zeros((cout,), jnp.float32)
        mean = jnp.zeros((cout,), jnp.float32)
        var = jnp.ones((cout,), jnp.float32)
        scale = gamma / jnp.sqrt(var + eps)
        w_eff = w * scale[:, None, None, None]
        b_eff = (b - mean) * scale + beta
        # (OC, Cin, KH, KW) -> (KH*KW*Cin, OC), matching NHWC tap-major patches.
        params[f"conv{li}_wmat"] = jnp.transpose(w_eff, (2, 3, 1, 0)).reshape(cin * 16, cout)
        params[f"conv{li}_bvec"] = b_eff

    fc1_w = uniform(keys[ki], (32, 256), 256); ki += 1   # torch layout (out, c*h*w)
    fc1_b = uniform(keys[ki], (32,), 256); ki += 1
    # Re-permute fc1 columns from torch (c, h, w) flatten to our (h, w, c) flatten
    # and transpose -> (256, 32), rows ordered (p, c) with p = h*2 + w.
    params["fc1_wmat"] = jnp.transpose(fc1_w.reshape(32, 64, 2, 2), (2, 3, 1, 0)).reshape(256, 32)
    params["fc1_b"] = fc1_b
    fc2_w = uniform(keys[ki], (2, 32), 32); ki += 1
    fc2_b = uniform(keys[ki], (2,), 32); ki += 1
    params["fc2_wmat"] = fc2_w.T
    params["fc2_b"] = fc2_b
    return params


# ----------------------------------------------------------------------------
# Forward pass (mirrors CNN.forward, inference semantics)
# ----------------------------------------------------------------------------
def cnn_forward(params, x):
    x = jnp.transpose(x, (0, 2, 3, 1))            # NCHW -> NHWC, once
    B = x.shape[0]

    # conv1..conv3: host-side NHWC im2col + one fused Pallas matmul each.
    for li in (1, 2, 3):
        p = im2col_nhwc(x)                        # (B, OH, OW, 16*C)
        _, OH, OW, K = p.shape
        w = params[f"conv{li}_wmat"]
        b = params[f"conv{li}_bvec"]
        M = B * OH * OW
        m_split = 2 if (M >= 256 and M % 16 == 0) else 1
        out = conv_matmul(p.reshape(M, K), w, b, slope=0.2, m_split=m_split)
        x = out.reshape(B, OH, OW, w.shape[1])    # stays NHWC, no transpose

    # conv4 + fc1 + fc2 fused in a single kernel. Rows made position-major so
    # the in-kernel fc1 contraction uses only contiguous slices.
    p = im2col_nhwc(x)                            # (B, 2, 2, 512)
    _, OH4, OW4, K4 = p.shape
    p4 = p.reshape(B, OH4 * OW4, K4).transpose(1, 0, 2).reshape(OH4 * OW4 * B, K4)
    return tail_fused(p4,
                      params["conv4_wmat"], params["conv4_bvec"],
                      params["fc1_wmat"], params["fc1_b"],
                      params["fc2_wmat"], params["fc2_b"],
                      batch=B)                    # (B, 2)


if __name__ == "__main__":
    key = jax.random.PRNGKey(0)
    pkey, xkey = jax.random.split(key)
    params = make_params(pkey)
    # Input (B, 3, 32, 32) so the conv stack reaches 64 x 2 x 2.
    x = jax.random.normal(xkey, (2, 3, 32, 32), jnp.float32)
    out = jax.jit(cnn_forward)(params, x)
    out = jax.block_until_ready(out)
    assert out.shape == (2, 2) and out.dtype == jnp.float32
    print("KERNEL_OK")
</pallas_src>

<mosaic_0001>
module attributes {stable_mosaic.version = 11 : i64} {
  func.func @_conv_matmul_kernel(%arg0: i32, %arg1: memref<256x48xf32, #tpu.memory_space<vmem>>, %arg2: memref<48x8xf32, #tpu.memory_space<vmem>>, %arg3: memref<1x8xf32, #tpu.memory_space<vmem>>, %arg4: memref<256x8xf32, #tpu.memory_space<vmem>>) attributes {dimension_semantics = [#tpu.dimension_semantics<parallel>], iteration_bounds = array<i64: 2>, scalar_prefetch = 0 : i64, scratch_operands = 0 : i64, tpu.core_type = #tpu.core_type<tc>, window_params = [{transform_indices = @transform_0, window_bounds = array<i64: 256, 48>}, {pipeline_mode = #tpu.pipeline_mode<synchronous>, transform_indices = @transform_1, window_bounds = array<i64: 48, 8>}, {pipeline_mode = #tpu.pipeline_mode<synchronous>, transform_indices = @transform_2, window_bounds = array<i64: 1, 8>}, {transform_indices = @transform_3, window_bounds = array<i64: 256, 8>}]} {
    %c0 = arith.constant 0 : index
    %c0_0 = arith.constant 0 : index
    %0 = vector.load %arg1[%c0, %c0_0] : memref<256x48xf32, #tpu.memory_space<vmem>>, vector<256x48xf32>
    %c0_1 = arith.constant 0 : index
    %c0_2 = arith.constant 0 : index
    %1 = vector.load %arg2[%c0_1, %c0_2] : memref<48x8xf32, #tpu.memory_space<vmem>>, vector<48x8xf32>
    %cst = arith.constant dense<0.000000e+00> : vector<256x8xf32>
    %2 = tpu.matmul %0, %1, %cst {dimension_numbers = #tpu.dot_dimension_numbers<[1], [0], [0], [1], [0, 0, 1, 1], [], []>} : vector<256x48xf32>, vector<48x8xf32>, vector<256x8xf32> -> vector<256x8xf32>
    %c0_3 = arith.constant 0 : index
    %c0_4 = arith.constant 0 : index
    %3 = vector.load %arg3[%c0_3, %c0_4] : memref<1x8xf32, #tpu.memory_space<vmem>>, vector<1x8xf32>
    %4 = vector.broadcast %3 : vector<1x8xf32> to vector<256x8xf32>
    %5 = arith.addf %2, %4 : vector<256x8xf32>
    %cst_5 = arith.constant 0.000000e+00 : f32
    %6 = vector.broadcast %cst_5 : f32 to vector<256x8xf32>
    %7 = arith.cmpf oge, %5, %6 : vector<256x8xf32>
    %cst_6 = arith.constant 2.000000e-01 : f32
    %8 = vector.broadcast %cst_6 : f32 to vector<256x8xf32>
    %9 = arith.mulf %8, %5 : vector<256x8xf32>
    %10 = arith.select %7, %5, %9 : vector<256x8xi1>, vector<256x8xf32>
    %c0_7 = arith.constant 0 : index
    %c0_8 = arith.constant 0 : index
    %11 = vector.load %arg4[%c0_7, %c0_8] : memref<256x8xf32, #tpu.memory_space<vmem>>, vector<256x8xf32>
    tpu.vector_store %arg4[%c0_7, %c0_8], %10 {strides = array<i32>} : memref<256x8xf32, #tpu.memory_space<vmem>>, vector<256x8xf32>,
    return
  }
  func.func @transform_0(%arg0: i32) -> (i32, i32) {
    %c0_i32 = arith.constant 0 : i32
    %c0_i32_0 = arith.constant 0 : i32
    return %arg0, %c0_i32 : i32, i32
  }
  func.func @transform_1(%arg0: i32) -> (i32, i32) {
    %c0_i32 = arith.constant 0 : i32
    %c0_i32_0 = arith.constant 0 : i32
    %c0_i32_1 = arith.constant 0 : i32
    return %c0_i32, %c0_i32_0 : i32, i32
  }
  func.func @transform_2(%arg0: i32) -> (i32, i32) {
    %c0_i32 = arith.constant 0 : i32
    %c0_i32_0 = arith.constant 0 : i32
    %c0_i32_1 = arith.constant 0 : i32
    return %c0_i32, %c0_i32_0 : i32, i32
  }
  func.func @transform_3(%arg0: i32) -> (i32, i32) {
    %c0_i32 = arith.constant 0 : i32
    %c0_i32_0 = arith.constant 0 : i32
    return %arg0, %c0_i32 : i32, i32
  }
}

module attributes {stable_mosaic.version = 11 : i64} {
  func.func @_conv_matmul_kernel(%arg0: memref<128x128xf32, #tpu.memory_space<vmem>>, %arg1: memref<128x16xf32, #tpu.memory_space<vmem>>, %arg2: memref<1x16xf32, #tpu.memory_space<vmem>>, %arg3: memref<128x16xf32, #tpu.memory_space<vmem>>) attributes {dimension_semantics = [], scalar_prefetch = 0 : i64, scratch_operands = 0 : i64, tpu.core_type = #tpu.core_type<tc>} {
    %c0 = arith.constant 0 : index
    %c0_0 = arith.constant 0 : index
    %0 = vector.load %arg0[%c0, %c0_0] : memref<128x128xf32, #tpu.memory_space<vmem>>, vector<128x128xf32>
    %c0_1 = arith.constant 0 : index
    %c0_2 = arith.constant 0 : index
    %1 = vector.load %arg1[%c0_1, %c0_2] : memref<128x16xf32, #tpu.memory_space<vmem>>, vector<128x16xf32>
    %cst = arith.constant dense<0.000000e+00> : vector<128x16xf32>
    %2 = tpu.matmul %0, %1, %cst {dimension_numbers = #tpu.dot_dimension_numbers<[1], [0], [0], [1], [0, 0, 1, 1], [], []>} : vector<128x128xf32>, vector<128x16xf32>, vector<128x16xf32> -> vector<128x16xf32>
    %c0_3 = arith.constant 0 : index
    %c0_4 = arith.constant 0 : index
    %3 = vector.load %arg2[%c0_3, %c0_4] : memref<1x16xf32, #tpu.memory_space<vmem>>, vector<1x16xf32>
    %4 = vector.broadcast %3 : vector<1x16xf32> to vector<128x16xf32>
    %5 = arith.addf %2, %4 : vector<128x16xf32>
    %cst_5 = arith.constant 0.000000e+00 : f32
    %6 = vector.broadcast %cst_5 : f32 to vector<128x16xf32>
    %7 = arith.cmpf oge, %5, %6 : vector<128x16xf32>
    %cst_6 = arith.constant 2.000000e-01 : f32
    %8 = vector.broadcast %cst_6 : f32 to vector<128x16xf32>
    %9 = arith.mulf %8, %5 : vector<128x16xf32>
    %10 = arith.select %7, %5, %9 : vector<128x16xi1>, vector<128x16xf32>
    %c0_7 = arith.constant 0 : index
    %c0_8 = arith.constant 0 : index
    %11 = vector.load %arg3[%c0_7, %c0_8] : memref<128x16xf32, #tpu.memory_space<vmem>>, vector<128x16xf32>
    tpu.vector_store %arg3[%c0_7, %c0_8], %10 {strides = array<i32>} : memref<128x16xf32, #tpu.memory_space<vmem>>, vector<128x16xf32>,
    return
  }
}

module attributes {stable_mosaic.version = 11 : i64} {
  func.func @_conv_matmul_kernel(%arg0: memref<32x256xf32, #tpu.memory_space<vmem>>, %arg1: memref<256x32xf32, #tpu.memory_space<vmem>>, %arg2: memref<1x32xf32, #tpu.memory_space<vmem>>, %arg3: memref<32x32xf32, #tpu.memory_space<vmem>>) attributes {dimension_semantics = [], scalar_prefetch = 0 : i64, scratch_operands = 0 : i64, tpu.core_type = #tpu.core_type<tc>} {
    %c0 = arith.constant 0 : index
    %c0_0 = arith.constant 0 : index
    %0 = vector.load %arg0[%c0, %c0_0] : memref<32x256xf32, #tpu.memory_space<vmem>>, vector<32x256xf32>
    %c0_1 = arith.constant 0 : index
    %c0_2 = arith.constant 0 : index
    %1 = vector.load %arg1[%c0_1, %c0_2] : memref<256x32xf32, #tpu.memory_space<vmem>>, vector<256x32xf32>
    %cst = arith.constant dense<0.000000e+00> : vector<32x32xf32>
    %2 = tpu.matmul %0, %1, %cst {dimension_numbers = #tpu.dot_dimension_numbers<[1], [0], [0], [1], [0, 0, 1, 1], [], []>} : vector<32x256xf32>, vector<256x32xf32>, vector<32x32xf32> -> vector<32x32xf32>
    %c0_3 = arith.constant 0 : index
    %c0_4 = arith.constant 0 : index
    %3 = vector.load %arg2[%c0_3, %c0_4] : memref<1x32xf32, #tpu.memory_space<vmem>>, vector<1x32xf32>
    %4 = vector.broadcast %3 : vector<1x32xf32> to vector<32x32xf32>
    %5 = arith.addf %2, %4 : vector<32x32xf32>
    %cst_5 = arith.constant 0.000000e+00 : f32
    %6 = vector.broadcast %cst_5 : f32 to vector<32x32xf32>
    %7 = arith.cmpf oge, %5, %6 : vector<32x32xf32>
    %cst_6 = arith.constant 2.000000e-01 : f32
    %8 = vector.broadcast %cst_6 : f32 to vector<32x32xf32>
    %9 = arith.mulf %8, %5 : vector<32x32xf32>
    %10 = arith.select %7, %5, %9 : vector<32x32xi1>, vector<32x32xf32>
    %c0_7 = arith.constant 0 : index
    %c0_8 = arith.constant 0 : index
    %11 = vector.load %arg3[%c0_7, %c0_8] : memref<32x32xf32, #tpu.memory_space<vmem>>, vector<32x32xf32>
    tpu.vector_store %arg3[%c0_7, %c0_8], %10 {strides = array<i32>} : memref<32x32xf32, #tpu.memory_space<vmem>>, vector<32x32xf32>,
    return
  }
}

module attributes {stable_mosaic.version = 11 : i64} {
  func.func @_tail_kernel(%arg0: memref<8x512xf32, #tpu.memory_space<vmem>>, %arg1: memref<512x64xf32, #tpu.memory_space<vmem>>, %arg2: memref<1x64xf32, #tpu.memory_space<vmem>>, %arg3: memref<256x32xf32, #tpu.memory_space<vmem>>, %arg4: memref<1x32xf32, #tpu.memory_space<vmem>>, %arg5: memref<32x2xf32, #tpu.memory_space<vmem>>, %arg6: memref<1x2xf32, #tpu.memory_space<vmem>>, %arg7: memref<2x2xf32, #tpu.memory_space<vmem>>) attributes {dimension_semantics = [], scalar_prefetch = 0 : i64, scratch_operands = 0 : i64, tpu.core_type = #tpu.core_type<tc>} {
    %c0 = arith.constant 0 : index
    %c0_0 = arith.constant 0 : index
    %0 = vector.load %arg0[%c0, %c0_0] : memref<8x512xf32, #tpu.memory_space<vmem>>, vector<8x512xf32>
    %c0_1 = arith.constant 0 : index
    %c0_2 = arith.constant 0 : index
    %1 = vector.load %arg1[%c0_1, %c0_2] : memref<512x64xf32, #tpu.memory_space<vmem>>, vector<512x64xf32>
    %cst = arith.constant dense<0.000000e+00> : vector<8x64xf32>
    %2 = tpu.matmul %0, %1, %cst {dimension_numbers = #tpu.dot_dimension_numbers<[1], [0], [0], [1], [0, 0, 1, 1], [], []>} : vector<8x512xf32>, vector<512x64xf32>, vector<8x64xf32> -> vector<8x64xf32>
    %c0_3 = arith.constant 0 : index
    %c0_4 = arith.constant 0 : index
    %3 = vector.load %arg2[%c0_3, %c0_4] : memref<1x64xf32, #tpu.memory_space<vmem>>, vector<1x64xf32>
    %4 = vector.broadcast %3 : vector<1x64xf32> to vector<8x64xf32>
    %5 = arith.addf %2, %4 : vector<8x64xf32>
    %cst_5 = arith.constant 0.000000e+00 : f32
    %6 = vector.broadcast %cst_5 : f32 to vector<8x64xf32>
    %7 = arith.cmpf oge, %5, %6 : vector<8x64xf32>
    %cst_6 = arith.constant 2.000000e-01 : f32
    %8 = vector.broadcast %cst_6 : f32 to vector<8x64xf32>
    %9 = arith.mulf %8, %5 : vector<8x64xf32>
    %10 = arith.select %7, %5, %9 : vector<8x64xi1>, vector<8x64xf32>
    %cst_7 = arith.constant 0.000000e+00 : f32
    %11 = vector.broadcast %cst_7 : f32 to vector<2x32xf32>
    %12 = vector.extract_strided_slice %10 {offsets = [0, 0], sizes = [2, 64], strides = [1, 1]} : vector<8x64xf32> to vector<2x64xf32>
    %c0_8 = arith.constant 0 : index
    %c0_9 = arith.constant 0 : index
    %13 = vector.load %arg3[%c0_8, %c0_9] : memref<256x32xf32, #tpu.memory_space<vmem>>, vector<64x32xf32>
    %cst_10 = arith.constant dense<0.000000e+00> : vector<2x32xf32>
    %14 = tpu.matmul %12, %13, %cst_10 {dimension_numbers = #tpu.dot_dimension_numbers<[1], [0], [0], [1], [0, 0, 1, 1], [], []>} : vector<2x64xf32>, vector<64x32xf32>, vector<2x32xf32> -> vector<2x32xf32>
    %15 = arith.addf %11, %14 : vector<2x32xf32>
    %16 = vector.extract_strided_slice %10 {offsets = [2, 0], sizes = [2, 64], strides = [1, 1]} : vector<8x64xf32> to vector<2x64xf32>
    %c64 = arith.constant 64 : index
    %c0_11 = arith.constant 0 : index
    %17 = vector.load %arg3[%c64, %c0_11] : memref<256x32xf32, #tpu.memory_space<vmem>>, vector<64x32xf32>
    %cst_12 = arith.constant dense<0.000000e+00> : vector<2x32xf32>
    %18 = tpu.matmul %16, %17, %cst_12 {dimension_numbers = #tpu.dot_dimension_numbers<[1], [0], [0], [1], [0, 0, 1, 1], [], []>} : vector<2x64xf32>, vector<64x32xf32>, vector<2x32xf32> -> vector<2x32xf32>
    %19 = arith.addf %15, %18 : vector<2x32xf32>
    %20 = vector.extract_strided_slice %10 {offsets = [4, 0], sizes = [2, 64], strides = [1, 1]} : vector<8x64xf32> to vector<2x64xf32>
    %c128 = arith.constant 128 : index
    %c0_13 = arith.constant 0 : index
    %21 = vector.load %arg3[%c128, %c0_13] : memref<256x32xf32, #tpu.memory_space<vmem>>, vector<64x32xf32>
    %cst_14 = arith.constant dense<0.000000e+00> : vector<2x32xf32>
    %22 = tpu.matmul %20, %21, %cst_14 {dimension_numbers = #tpu.dot_dimension_numbers<[1], [0], [0], [1], [0, 0, 1, 1], [], []>} : vector<2x64xf32>, vector<64x32xf32>, vector<2x32xf32> -> vector<2x32xf32>
    %23 = arith.addf %19, %22 : vector<2x32xf32>
    %24 = vector.extract_strided_slice %10 {offsets = [6, 0], sizes = [2, 64], strides = [1, 1]} : vector<8x64xf32> to vector<2x64xf32>
    %c192 = arith.constant 192 : index
    %c0_15 = arith.constant 0 : index
    %25 = vector.load %arg3[%c192, %c0_15] : memref<256x32xf32, #tpu.memory_space<vmem>>, vector<64x32xf32>
    %cst_16 = arith.constant dense<0.000000e+00> : vector<2x32xf32>
    %26 = tpu.matmul %24, %25, %cst_16 {dimension_numbers = #tpu.dot_dimension_numbers<[1], [0], [0], [1], [0, 0, 1, 1], [], []>} : vector<2x64xf32>, vector<64x32xf32>, vector<2x32xf32> -> vector<2x32xf32>
    %27 = arith.addf %23, %26 : vector<2x32xf32>
    %c0_17 = arith.constant 0 : index
    %c0_18 = arith.constant 0 : index
    %28 = vector.load %arg4[%c0_17, %c0_18] : memref<1x32xf32, #tpu.memory_space<vmem>>, vector<1x32xf32>
    %29 = vector.broadcast %28 : vector<1x32xf32> to vector<2x32xf32>
    %30 = arith.addf %27, %29 : vector<2x32xf32>
    %cst_19 = arith.constant 0.000000e+00 : f32
    %31 = vector.broadcast %cst_19 : f32 to vector<2x32xf32>
    %32 = arith.cmpf oge, %30, %31 : vector<2x32xf32>
    %cst_20 = arith.constant 0.00999999977 : f32
    %33 = vector.broadcast %cst_20 : f32 to vector<2x32xf32>
    %34 = arith.mulf %33, %30 : vector<2x32xf32>
    %35 = arith.select %32, %30, %34 : vector<2x32xi1>, vector<2x32xf32>
    %c0_21 = arith.constant 0 : index
    %c0_22 = arith.constant 0 : index
    %36 = vector.load %arg5[%c0_21, %c0_22] : memref<32x2xf32, #tpu.memory_space<vmem>>, vector<32x2xf32>
    %cst_23 = arith.constant dense<0.000000e+00> : vector<2x2xf32>
    %37 = tpu.matmul %35, %36, %cst_23 {dimension_numbers = #tpu.dot_dimension_numbers<[1], [0], [0], [1], [0, 0, 1, 1], [], []>} : vector<2x32xf32>, vector<32x2xf32>, vector<2x2xf32> -> vector<2x2xf32>
    %c0_24 = arith.constant 0 : index
    %c0_25 = arith.constant 0 : index
    %38 = vector.load %arg6[%c0_24, %c0_25] : memref<1x2xf32, #tpu.memory_space<vmem>>, vector<1x2xf32>
    %39 = vector.broadcast %38 : vector<1x2xf32> to vector<2x2xf32>
    %40 = arith.addf %37, %39 : vector<2x2xf32>
    %c0_26 = arith.constant 0 : index
    %c0_27 = arith.constant 0 : index
    %41 = vector.load %arg7[%c0_26, %c0_27] : memref<2x2xf32, #tpu.memory_space<vmem>>, vector<2x2xf32>
    tpu.vector_store %arg7[%c0_26, %c0_27], %40 {strides = array<i32>} : memref<2x2xf32, #tpu.memory_space<vmem>>, vector<2x2xf32>,
    return
  }
}

</mosaic_0001>

<bundles_post_ra>
// kernel: cnn_forward.4
= control target key start
LH: loop header
LB: loop body
LE: loop exit
PB: predicated region body
PF: predicated region fallthrough
CT: control target
= control target key end

     0   :  { %s922_s12 = smov 0   ;;  %s1133_s0 = inlined_call_operand.vmem [shape: f32[512,48], index: 0, kind: input, shape index: {}]   ;;  %s1134_s1 = inlined_call_operand.vmem [shape: f32[48,8], index: 1, kind: input, shape index: {}]   ;;  %s1135_s2 = inlined_call_operand.vmem [shape: f32[1,8], index: 2, kind: input, shape index: {}]   ;;  %s1136_s3 = inlined_call_operand.vmem [shape: f32[512,8], index: 3, kind: output, shape index: {}]  }
   0x1 LB: > { %s726_s13 = sadd.s32 4294967295, %s900_s12   ;;  %p730_p0 = scmp.ge.s32.totalorder %s900_s12, 1  ;;  %s900_s12 = sphi %s922_s12, %s13_s12  }
   0x2   : > { %p138_p1 = scmp.lt.s32.totalorder %s900_s12, 3 }
   0x4   : > { %p139_p2 = pnand %p730_p0, %p138_p1 }
   0x5   : > { %v206_v0 = vld [vmem:[%s1134_s1] sm:$0xff] (!%p139_p2)  ;;  %v207_v1 = vld [vmem:[%s1134_s1 + $0x8] sm:$0xff] (!%p139_p2)  ;;  %v208_v2 = vld [vmem:[%s1134_s1 + $0x10] sm:$0xff] (!%p139_p2)  ;;  %s731_s20 = sshll.u32 (!%p139_p2), %s726_s13, 5  ;;  %vm219_vm0 = vcmask (!%p139_p2), 392192   ;;  %vm637_vm1 = vcmask (!%p139_p2), 64512  }
   0x6   : > { %142 = sbr.rel (%p139_p2) target bundleno = 270 (0x10e), region = 32  ;;  %v868_v3 = vpack.c.bf16 (!%p139_p2), %v207_v1, %v206_v0  ;;  %v209_v4 = vld [vmem:[%s1134_s1 + $0x18] sm:$0xff] (!%p139_p2)  ;;  %p163_p3 = scmp.lt.s32.totalorder (!%p139_p2), %s731_s20, 63  ;;  %v210_v6 = vld [vmem:[%s1134_s1 + $0x20] sm:$0xff] (!%p139_p2)  ;;  %v211_v7 = vld [vmem:[%s1134_s1 + $0x28] sm:$0xff] (!%p139_p2) }
   0x7   : > { %v872_v5 = vpack.c.bf16 (!%p139_p2), %v209_v4, %v208_v2  ;;  %v876_v8 = vpack.c.bf16 (!%p139_p2), %v211_v7, %v210_v6  ;;  %v1025_v41 = vld [vmem:[%s1135_s2] ss:$0 sm:$0xff] (!%p139_p2) }
   0x8   : > { %869 = vmatprep.subr.bf16.mxu0 (!%p139_p2), %v868_v3  ;;  %880 = vmatprep.subr.bf16.mxu1 (!%p139_p2), %v868_v3 }
   0x9   : > { %871 = vmatpush3.bf16.msra.mxu0 (!%p139_p2), %v868_v3  ;;  %883 = vmatpush3.bf16.msra.mxu1 (!%p139_p2), %v868_v3 }
   0xa   : > { %873 = vmatprep.subr.bf16.mxu0 (!%p139_p2), %v872_v5  ;;  %881 = vmatprep.subr.bf16.mxu1 (!%p139_p2), %v872_v5 }
   0xd   : > { %s1138_s20 = smov (!%p163_p3, %s731_s20), 63  ;;  %875 = vmatpush3.bf16.msra.mxu0 %v872_v5  ;;  %884 = vmatpush3.bf16.msra.mxu1 %v872_v5 }
   0xe   : > { %s732_s27 = sshll.u32 %s1138_s20, 3  ;;  %877 = vmatprep.subr.bf16.mxu0 %v876_v8  ;;  %882 = vmatprep.subr.bf16.mxu1 %v876_v8 }
   0xf   : > { %s956_s30 = scalar_lea.vmem %s1133_s0, %s732_s27  ;;  %s1036_s8 = scalar_lea.vmem %s1136_s3, %s732_s27 }
  0x10   : > { %v174_v9 = vld [vmem:[%s956_s30] sm:$0xff]  ;;  %v175_v11 = vld [vmem:[%s956_s30 + $0x8] sm:$0xff]  ;;  %v176_v13 = vld [vmem:[%s956_s30 + $0x10] sm:$0xff] }
  0x11   : > { %v190_v10 = vld [vmem:[%s956_s30 + $0x80] sm:$0xff]  ;;  %820 = vmatprep.mubr.msk.f32.mxu0 %vm219_vm0, %v174_v9  ;;  %879 = vmatpush3.bf16.msra.mxu0 %v876_v8  ;;  %v191_v12 = vld [vmem:[%s956_s30 + $0x88] sm:$0xff]  ;;  %v192_v14 = vld [vmem:[%s956_s30 + $0x90] sm:$0xff] }
  0x12   : > { %844 = vmatprep.mubr.msk.f32.mxu1 %vm219_vm0, %v190_v10  ;;  %885 = vmatpush3.bf16.msra.mxu1 %v876_v8  ;;  %v177_v15 = vld [vmem:[%s956_s30 + $0x18] sm:$0xff]  ;;  %v178_v17 = vld [vmem:[%s956_s30 + $0x20] sm:$0xff]  ;;  %v179_v19 = vld [vmem:[%s956_s30 + $0x28] sm:$0xff] }
  0x13   : > { %v193_v16 = vld [vmem:[%s956_s30 + $0x98] sm:$0xff]  ;;  %v194_v18 = vld [vmem:[%s956_s30 + $0xa0] sm:$0xff]  ;;  %v195_v20 = vld [vmem:[%s956_s30 + $0xa8] sm:$0xff] }
  0x14   : > { %821 = vmatmul.mubr.msk.f32.vlgmr.msra.gmra.mrb[0].mxu0 %vm219_vm0, %v175_v11  ;;  %v180_v21 = vld [vmem:[%s956_s30 + $0x30] sm:$0xff]  ;;  %v181_v23 = vld [vmem:[%s956_s30 + $0x38] sm:$0xff]  ;;  %v182_v25 = vld [vmem:[%s956_s30 + $0x40] sm:$0xff] }
  0x15   : > { %845 = vmatmul.mubr.msk.f32.vlgmr.msra.gmra.mrb[0].mxu1 %vm219_vm0, %v191_v12  ;;  %823 = vmatprep.mubr.msk.f32.mxu0 %vm219_vm0, %v176_v13  ;;  %v196_v22 = vld [vmem:[%s956_s30 + $0xb0] sm:$0xff]  ;;  %v197_v24 = vld [vmem:[%s956_s30 + $0xb8] sm:$0xff]  ;;  %v198_v26 = vld [vmem:[%s956_s30 + $0xc0] sm:$0xff] }
  0x16   : > { %847 = vmatprep.mubr.msk.f32.mxu1 %vm219_vm0, %v192_v14  ;;  %v183_v27 = vld [vmem:[%s956_s30 + $0x48] sm:$0xff]  ;;  %v184_v29 = vld [vmem:[%s956_s30 + $0x50] sm:$0xff]  ;;  %v185_v31 = vld [vmem:[%s956_s30 + $0x58] sm:$0xff] }
  0x17   : > { %v199_v28 = vld [vmem:[%s956_s30 + $0xc8] sm:$0xff]  ;;  %v200_v30 = vld [vmem:[%s956_s30 + $0xd0] sm:$0xff]  ;;  %v201_v32 = vld [vmem:[%s956_s30 + $0xd8] sm:$0xff] }
  0x18   : > { %824 = vmatmul.mubr.msk.f32.gmra.mrb[2].mxu0 %vm219_vm0, %v177_v15  ;;  %v186_v33 = vld [vmem:[%s956_s30 + $0x60] sm:$0xff]  ;;  %v187_v35 = vld [vmem:[%s956_s30 + $0x68] sm:$0xff]  ;;  %v188_v37 = vld [vmem:[%s956_s30 + $0x70] sm:$0xff] }
  0x19   : > { %848 = vmatmul.mubr.msk.f32.gmra.mrb[2].mxu1 %vm219_vm0, %v193_v16  ;;  %826 = vmatprep.mubr.msk.f32.mxu0 %vm219_vm0, %v178_v17  ;;  %v202_v34 = vld [vmem:[%s956_s30 + $0xe0] sm:$0xff]  ;;  %v203_v36 = vld [vmem:[%s956_s30 + $0xe8] sm:$0xff]  ;;  %v204_v38 = vld [vmem:[%s956_s30 + $0xf0] sm:$0xff] }
  0x1a   : > { %850 = vmatprep.mubr.msk.f32.mxu1 %vm219_vm0, %v194_v18  ;;  %v189_v39 = vld [vmem:[%s956_s30 + $0x78] sm:$0xff] }
  0x1b   : > { %v205_v40 = vld [vmem:[%s956_s30 + $0xf8] sm:$0xff] }
  0x1c   : > { %827 = vmatmul.mubr.msk.f32.gmra.mrb[4].mxu0 %vm219_vm0, %v179_v19 }
  0x1d   : > { %851 = vmatmul.mubr.msk.f32.gmra.mrb[4].mxu1 %vm219_vm0, %v195_v20  ;;  %829 = vmatprep.mubr.msk.f32.mxu0 %vm219_vm0, %v180_v21 }
  0x1e   : > { %853 = vmatprep.mubr.msk.f32.mxu1 %vm219_vm0, %v196_v22 }
  0x20   : > { %830 = vmatmul.mubr.msk.f32.gmra.mrb[6].mxu0 %vm219_vm0, %v181_v23 }
  0x21   : > { %854 = vmatmul.mubr.msk.f32.gmra.mrb[6].mxu1 %vm219_vm0, %v197_v24  ;;  %832 = vmatprep.mubr.msk.f32.mxu0 %vm219_vm0, %v182_v25 }
  0x22   : > { %856 = vmatprep.mubr.msk.f32.mxu1 %vm219_vm0, %v198_v26 }
  0x24   : > { %833 = vmatmul.mubr.msk.f32.gmra.mrb[8].mxu0 %vm219_vm0, %v183_v27 }
  0x25   : > { %857 = vmatmul.mubr.msk.f32.gmra.mrb[8].mxu1 %vm219_vm0, %v199_v28  ;;  %835 = vmatprep.mubr.msk.f32.mxu0 %vm219_vm0, %v184_v29 }
  0x26   : > { %859 = vmatprep.mubr.msk.f32.mxu1 %vm219_vm0, %v200_v30 }
  0x28   : > { %836 = vmatmul.mubr.msk.f32.gmra.mrb[10].mxu0 %vm219_vm0, %v185_v31 }
  0x29   : > { %860 = vmatmul.mubr.msk.f32.gmra.mrb[10].mxu1 %vm219_vm0, %v201_v32  ;;  %838 = vmatprep.mubr.msk.f32.mxu0 %vm219_vm0, %v186_v33 }
  0x2a   : > { %862 = vmatprep.mubr.msk.f32.mxu1 %vm219_vm0, %v202_v34 }
  0x2c   : > { %839 = vmatmul.mubr.msk.f32.gmra.mrb[12].mxu0 %vm219_vm0, %v187_v35 }
  0x2d   : > { %863 = vmatmul.mubr.msk.f32.gmra.mrb[12].mxu1 %vm219_vm0, %v203_v36  ;;  %841 = vmatprep.mubr.msk.f32.mxu0 %vm219_vm0, %v188_v37 }
  0x2e   : > { %865 = vmatprep.mubr.msk.f32.mxu1 %vm219_vm0, %v204_v38 }
  0x30   : > { %842 = vmatmul.mubr.msk.f32.gmra.mrb[14].mxu0 %vm219_vm0, %v189_v39 }
  0x31   : > { %866 = vmatmul.mubr.msk.f32.gmra.mrb[14].mxu1 %vm219_vm0, %v205_v40 }
  0xe7   : > { %v822_v42 = vpop.f32.mrb[0].mxu0 }
  0xe8   : > { %v846_v43 = vpop.f32.mrb[0].mxu1  ;;  %v388_v44 = vadd.f32 %v822_v42, %v1025_v41  ;;  %v382_v46 = vpop.f32.mrb[1].mxu0 }
  0xe9   : > { %v468_v45 = vadd.f32 %v846_v43, %v1025_v41  ;;  %v462_v47 = vpop.f32.mrb[1].mxu1  ;;  %v383_v48 = vadd.f32 %v1025_v41, %v382_v46 }
  0xea   : > { %v463_v49 = vadd.f32 %v1025_v41, %v462_v47  ;;  %vm542_vm2 = vcmp.ge.f32.partialorder %v388_v44, 0.0  ;;  %v574_v50 = vmul.f32 0.2, %v388_v44 }
  0xeb   : > { %vm558_vm3 = vcmp.ge.f32.partialorder %v468_v45, 0.0  ;;  %v590_v51 = vmul.f32 0.2, %v468_v45  ;;  %vm541_vm4 = vcmp.ge.f32.partialorder %v383_v48, 0.0  ;;  %v573_v52 = vmul.f32 0.2, %v383_v48 }
  0xec   : > { %vm557_vm5 = vcmp.ge.f32.partialorder %v463_v49, 0.0  ;;  %v589_v53 = vmul.f32 0.2, %v463_v49  ;;  %v606_v54 = vsel %vm542_vm2, %v388_v44, %v574_v50  ;;  %v825_v56 = vpop.f32.mrb[2].mxu0  ;;  %v849_v57 = vpop.f32.mrb[2].mxu1 }
  0xed   : > { %v622_v55 = vsel %vm558_vm3, %v468_v45, %v590_v51  ;;  %639 = vst.msk [vmem:[%s1036_s8 + $0x8] sm:$0xff] %vm637_vm1, %v606_v54  ;;  %v605_v58 = vsel %vm541_vm4, %v383_v48, %v573_v52  ;;  %v398_v60 = vadd.f32 %v825_v56, %v1025_v41  ;;  %v478_v61 = vadd.f32 %v849_v57, %v1025_v41  ;;  %v392_v62 = vpop.f32.mrb[3].mxu0  ;;  %v472_v63 = vpop.f32.mrb[3].mxu1 }
  0xee   : > { %655 = vst.msk [vmem:[%s1036_s8 + $0x88] sm:$0xff] %vm637_vm1, %v622_v55  ;;  %v621_v59 = vsel %vm557_vm5, %v463_v49, %v589_v53  ;;  %638 = vst.msk [vmem:[%s1036_s8] sm:$0xff] %vm637_vm1, %v605_v58  ;;  %v393_v0 = vadd.f32 %v1025_v41, %v392_v62  ;;  %v473_v1 = vadd.f32 %v1025_v41, %v472_v63 }
  0xef   : > { %654 = vst.msk [vmem:[%s1036_s8 + $0x80] sm:$0xff] %vm637_vm1, %v621_v59  ;;  %vm544_vm6 = vcmp.ge.f32.partialorder %v398_v60, 0.0  ;;  %v576_v2 = vmul.f32 0.2, %v398_v60  ;;  %vm560_vm7 = vcmp.ge.f32.partialorder %v478_v61, 0.0  ;;  %v828_v8 = vpop.f32.mrb[4].mxu0 }
  0xf0   : > { %v592_v3 = vmul.f32 0.2, %v478_v61  ;;  %vm543_vm8 = vcmp.ge.f32.partialorder %v393_v0, 0.0  ;;  %v575_v4 = vmul.f32 0.2, %v393_v0  ;;  %vm559_vm9 = vcmp.ge.f32.partialorder %v473_v1, 0.0 }
  0xf1   : > { %v591_v5 = vmul.f32 0.2, %v473_v1  ;;  %v608_v6 = vsel %vm544_vm6, %v398_v60, %v576_v2  ;;  %v852_v9 = vpop.f32.mrb[4].mxu1  ;;  %v408_v12 = vadd.f32 %v828_v8, %v1025_v41  ;;  %v402_v14 = vpop.f32.mrb[5].mxu0 }
  0xf2   : > { %v624_v7 = vsel %vm560_vm7, %v478_v61, %v592_v3  ;;  %641 = vst.msk [vmem:[%s1036_s8 + $0x18] sm:$0xff] %vm637_vm1, %v608_v6  ;;  %v607_v10 = vsel %vm543_vm8, %v393_v0, %v575_v4  ;;  %v488_v13 = vadd.f32 %v852_v9, %v1025_v41  ;;  %v482_v15 = vpop.f32.mrb[5].mxu1  ;;  %v403_v16 = vadd.f32 %v1025_v41, %v402_v14 }
  0xf3   : > { %657 = vst.msk [vmem:[%s1036_s8 + $0x98] sm:$0xff] %vm637_vm1, %v624_v7  ;;  %v623_v11 = vsel %vm559_vm9, %v473_v1, %v591_v5  ;;  %640 = vst.msk [vmem:[%s1036_s8 + $0x10] sm:$0xff] %vm637_vm1, %v607_v10  ;;  %v483_v17 = vadd.f32 %v1025_v41, %v482_v15  ;;  %v831_v18 = vpop.f32.mrb[6].mxu0  ;;  %vm546_vm10 = vcmp.ge.f32.partialorder %v408_v12, 0.0  ;;  %v578_v20 = vmul.f32 0.2, %v408_v12 }
  0xf4   : > { %656 = vst.msk [vmem:[%s1036_s8 + $0x90] sm:$0xff] %vm637_vm1, %v623_v11  ;;  %v855_v19 = vpop.f32.mrb[6].mxu1  ;;  %vm562_vm11 = vcmp.ge.f32.partialorder %v488_v13, 0.0  ;;  %v594_v21 = vmul.f32 0.2, %v488_v13  ;;  %vm545_vm12 = vcmp.ge.f32.partialorder %v403_v16, 0.0  ;;  %v418_v26 = vadd.f32 %v831_v18, %v1025_v41 }
  0xf5   : > { %v577_v22 = vmul.f32 0.2, %v403_v16  ;;  %vm561_vm13 = vcmp.ge.f32.partialorder %v483_v17, 0.0  ;;  %v593_v23 = vmul.f32 0.2, %v483_v17  ;;  %v610_v24 = vsel %vm546_vm10, %v408_v12, %v578_v20  ;;  %v412_v28 = vpop.f32.mrb[7].mxu0 }
  0xf6   : > { %v626_v25 = vsel %vm562_vm11, %v488_v13, %v594_v21  ;;  %v498_v27 = vadd.f32 %v855_v19, %v1025_v41  ;;  %v492_v29 = vpop.f32.mrb[7].mxu1  ;;  %643 = vst.msk [vmem:[%s1036_s8 + $0x28] sm:$0xff] %vm637_vm1, %v610_v24  ;;  %v413_v32 = vadd.f32 %v1025_v41, %v412_v28  ;;  %vm548_vm14 = vcmp.ge.f32.partialorder %v418_v26, 0.0 }
  0xf7   : > { %659 = vst.msk [vmem:[%s1036_s8 + $0xa8] sm:$0xff] %vm637_vm1, %v626_v25  ;;  %v609_v30 = vsel %vm545_vm12, %v403_v16, %v577_v22  ;;  %v625_v31 = vsel %vm561_vm13, %v483_v17, %v593_v23  ;;  %v493_v33 = vadd.f32 %v1025_v41, %v492_v29  ;;  %v834_v34 = vpop.f32.mrb[8].mxu0  ;;  %v580_v36 = vmul.f32 0.2, %v418_v26 }
  0xf8   : > { %v858_v35 = vpop.f32.mrb[8].mxu1  ;;  %642 = vst.msk [vmem:[%s1036_s8 + $0x20] sm:$0xff] %vm637_vm1, %v609_v30  ;;  %658 = vst.msk [vmem:[%s1036_s8 + $0xa0] sm:$0xff] %vm637_vm1, %v625_v31  ;;  %vm564_vm15 = vcmp.ge.f32.partialorder %v498_v27, 0.0  ;;  %v596_v37 = vmul.f32 0.2, %v498_v27  ;;  %v428_v43 = vadd.f32 %v834_v34, %v1025_v41 }
  0xf9   : > { %vm547_vm0 = vcmp.ge.f32.partialorder %v413_v32, 0.0  ;;  %v579_v38 = vmul.f32 0.2, %v413_v32  ;;  %vm563_vm2 = vcmp.ge.f32.partialorder %v493_v33, 0.0  ;;  %v595_v39 = vmul.f32 0.2, %v493_v33 }
  0xfa   : > { %v612_v40 = vsel %vm548_vm14, %v418_v26, %v580_v36  ;;  %v628_v42 = vsel %vm564_vm15, %v498_v27, %v596_v37  ;;  %v508_v44 = vadd.f32 %v858_v35, %v1025_v41  ;;  %v422_v45 = vpop.f32.mrb[9].mxu0  ;;  %v502_v46 = vpop.f32.mrb[9].mxu1  ;;  %vm550_vm3 = vcmp.ge.f32.partialorder %v428_v43, 0.0 }
  0xfb   : > { %645 = vst.msk [vmem:[%s1036_s8 + $0x38] sm:$0xff] %vm637_vm1, %v612_v40  ;;  %661 = vst.msk [vmem:[%s1036_s8 + $0xb8] sm:$0xff] %vm637_vm1, %v628_v42  ;;  %v611_v47 = vsel %vm547_vm0, %v413_v32, %v579_v38  ;;  %v627_v48 = vsel %vm563_vm2, %v493_v33, %v595_v39  ;;  %v423_v49 = vadd.f32 %v1025_v41, %v422_v45  ;;  %v837_v51 = vpop.f32.mrb[10].mxu0  ;;  %v582_v53 = vmul.f32 0.2, %v428_v43 }
  0xfc   : > { %v503_v50 = vadd.f32 %v1025_v41, %v502_v46  ;;  %v861_v52 = vpop.f32.mrb[10].mxu1  ;;  %644 = vst.msk [vmem:[%s1036_s8 + $0x30] sm:$0xff] %vm637_vm1, %v611_v47  ;;  %660 = vst.msk [vmem:[%s1036_s8 + $0xb0] sm:$0xff] %vm637_vm1, %v627_v48  ;;  %vm566_vm4 = vcmp.ge.f32.partialorder %v508_v44, 0.0  ;;  %v598_v54 = vmul.f32 0.2, %v508_v44  ;;  %v438_v59 = vadd.f32 %v837_v51, %v1025_v41 }
  0xfd   : > { %vm549_vm5 = vcmp.ge.f32.partialorder %v423_v49, 0.0  ;;  %v581_v55 = vmul.f32 0.2, %v423_v49  ;;  %v614_v57 = vsel %vm550_vm3, %v428_v43, %v582_v53  ;;  %v518_v60 = vadd.f32 %v861_v52, %v1025_v41  ;;  %v432_v61 = vpop.f32.mrb[11].mxu0  ;;  %v512_v62 = vpop.f32.mrb[11].mxu1 }
  0xfe   : > { %vm565_vm6 = vcmp.ge.f32.partialorder %v503_v50, 0.0  ;;  %v597_v56 = vmul.f32 0.2, %v503_v50  ;;  %v630_v58 = vsel %vm566_vm4, %v508_v44, %v598_v54  ;;  %647 = vst.msk [vmem:[%s1036_s8 + $0x48] sm:$0xff] %vm637_vm1, %v614_v57  ;;  %v433_v1 = vadd.f32 %v1025_v41, %v432_v61 }
  0xff   : > { %663 = vst.msk [vmem:[%s1036_s8 + $0xc8] sm:$0xff] %vm637_vm1, %v630_v58  ;;  %v613_v63 = vsel %vm549_vm5, %v423_v49, %v581_v55  ;;  %v513_v2 = vadd.f32 %v1025_v41, %v512_v62  ;;  %v840_v3 = vpop.f32.mrb[12].mxu0  ;;  %vm552_vm7 = vcmp.ge.f32.partialorder %v438_v59, 0.0  ;;  %v584_v5 = vmul.f32 0.2, %v438_v59 }
 0x100   : > { %v629_v0 = vsel %vm565_vm6, %v503_v50, %v597_v56  ;;  %v864_v4 = vpop.f32.mrb[12].mxu1  ;;  %646 = vst.msk [vmem:[%s1036_s8 + $0x40] sm:$0xff] %vm637_vm1, %v613_v63  ;;  %vm568_vm8 = vcmp.ge.f32.partialorder %v518_v60, 0.0  ;;  %v600_v6 = vmul.f32 0.2, %v518_v60  ;;  %vm551_vm9 = vcmp.ge.f32.partialorder %v433_v1, 0.0 }
 0x101   : > { %662 = vst.msk [vmem:[%s1036_s8 + $0xc0] sm:$0xff] %vm637_vm1, %v629_v0  ;;  %v583_v7 = vmul.f32 0.2, %v433_v1  ;;  %vm567_vm10 = vcmp.ge.f32.partialorder %v513_v2, 0.0  ;;  %v599_v8 = vmul.f32 0.2, %v513_v2  ;;  %v616_v9 = vsel %vm552_vm7, %v438_v59, %v584_v5 }
 0x102   : > { %v632_v10 = vsel %vm568_vm8, %v518_v60, %v600_v6  ;;  %v448_v11 = vadd.f32 %v840_v3, %v1025_v41  ;;  %v528_v12 = vadd.f32 %v864_v4, %v1025_v41  ;;  %v442_v13 = vpop.f32.mrb[13].mxu0  ;;  %v522_v14 = vpop.f32.mrb[13].mxu1  ;;  %649 = vst.msk [vmem:[%s1036_s8 + $0x58] sm:$0xff] %vm637_vm1, %v616_v9 }
 0x103   : > { %665 = vst.msk [vmem:[%s1036_s8 + $0xd8] sm:$0xff] %vm637_vm1, %v632_v10  ;;  %v615_v15 = vsel %vm551_vm9, %v433_v1, %v583_v7  ;;  %v631_v16 = vsel %vm567_vm10, %v513_v2, %v599_v8  ;;  %v443_v17 = vadd.f32 %v1025_v41, %v442_v13  ;;  %v523_v18 = vadd.f32 %v1025_v41, %v522_v14  ;;  %v843_v19 = vpop.f32.mrb[14].mxu0 }
 0x104   : > { %v867_v20 = vpop.f32.mrb[14].mxu1  ;;  %648 = vst.msk [vmem:[%s1036_s8 + $0x50] sm:$0xff] %vm637_vm1, %v615_v15  ;;  %664 = vst.msk [vmem:[%s1036_s8 + $0xd0] sm:$0xff] %vm637_vm1, %v631_v16  ;;  %vm554_vm11 = vcmp.ge.f32.partialorder %v448_v11, 0.0  ;;  %v586_v21 = vmul.f32 0.2, %v448_v11  ;;  %v458_v27 = vadd.f32 %v843_v19, %v1025_v41 }
 0x105   : > { %vm570_vm12 = vcmp.ge.f32.partialorder %v528_v12, 0.0  ;;  %v602_v22 = vmul.f32 0.2, %v528_v12  ;;  %vm553_vm13 = vcmp.ge.f32.partialorder %v443_v17, 0.0  ;;  %v585_v23 = vmul.f32 0.2, %v443_v17 }
 0x106   : > { %vm569_vm14 = vcmp.ge.f32.partialorder %v523_v18, 0.0  ;;  %v601_v24 = vmul.f32 0.2, %v523_v18  ;;  %v618_v25 = vsel %vm554_vm11, %v448_v11, %v586_v21  ;;  %v538_v28 = vadd.f32 %v867_v20, %v1025_v41  ;;  %v452_v29 = vpop.f32.mrb[15].mxu0  ;;  %v532_v30 = vpop.f32.mrb[15].mxu1 }
 0x107   : > { %v634_v26 = vsel %vm570_vm12, %v528_v12, %v602_v22  ;;  %651 = vst.msk [vmem:[%s1036_s8 + $0x68] sm:$0xff] %vm637_vm1, %v618_v25  ;;  %v617_v31 = vsel %vm553_vm13, %v443_v17, %v585_v23  ;;  %v453_v33 = vadd.f32 %v1025_v41, %v452_v29  ;;  %v533_v34 = vadd.f32 %v1025_v41, %v532_v30 }
 0x108   : > { %667 = vst.msk [vmem:[%s1036_s8 + $0xe8] sm:$0xff] %vm637_vm1, %v634_v26  ;;  %v633_v32 = vsel %vm569_vm14, %v523_v18, %v601_v24  ;;  %650 = vst.msk [vmem:[%s1036_s8 + $0x60] sm:$0xff] %vm637_vm1, %v617_v31  ;;  %vm556_vm15 = vcmp.ge.f32.partialorder %v458_v27, 0.0  ;;  %v588_v35 = vmul.f32 0.2, %v458_v27  ;;  %vm572_vm0 = vcmp.ge.f32.partialorder %v538_v28, 0.0 }
 0x109   : > { %666 = vst.msk [vmem:[%s1036_s8 + $0xe0] sm:$0xff] %vm637_vm1, %v633_v32  ;;  %v604_v36 = vmul.f32 0.2, %v538_v28  ;;  %vm555_vm2 = vcmp.ge.f32.partialorder %v453_v33, 0.0  ;;  %v587_v37 = vmul.f32 0.2, %v453_v33 }
 0x10a   : > { %vm571_vm3 = vcmp.ge.f32.partialorder %v533_v34, 0.0  ;;  %v603_v38 = vmul.f32 0.2, %v533_v34  ;;  %v620_v39 = vsel %vm556_vm15, %v458_v27, %v588_v35 }
 0x10b   : > { %v636_v40 = vsel %vm572_vm0, %v538_v28, %v604_v36  ;;  %653 = vst.msk [vmem:[%s1036_s8 + $0x78] sm:$0xff] %vm637_vm1, %v620_v39  ;;  %v619_v41 = vsel %vm555_vm2, %v453_v33, %v587_v37 }
 0x10c   : > { %669 = vst.msk [vmem:[%s1036_s8 + $0xf8] sm:$0xff] %vm637_vm1, %v636_v40  ;;  %v635_v42 = vsel %vm571_vm3, %v533_v34, %v603_v38  ;;  %652 = vst.msk [vmem:[%s1036_s8 + $0x70] sm:$0xff] %vm637_vm1, %v619_v41 }
 0x10d   : > { %668 = vst.msk [vmem:[%s1036_s8 + $0xf0] sm:$0xff] %vm637_vm1, %v635_v42 }
 0x10e PF: > { %s13_s12 = sadd.s32 1, %s900_s12  }
 0x10f   : > { %p10_p4 = scmp.ge.s32.totalorder %s13_s12, 4  }
 0x111   :  { %12 = sbr.rel (!%p10_p4) target bundleno = 1 (0x1), region = 62 }

// kernel: cnn_forward.5
= control target key start
LH: loop header
LB: loop body
LE: loop exit
PB: predicated region body
PF: predicated region fallthrough
CT: control target
= control target key end

     0   :  { %vm246_vm0 = vcmask 130048   ;;  %s605_s1 = inlined_call_operand.vmem [shape: f32[128,16], index: 1, kind: input, shape index: {}]   ;;  %s606_s0 = inlined_call_operand.vmem [shape: f32[128,128], index: 0, kind: input, shape index: {}]   ;;  %s607_s2 = inlined_call_operand.vmem [shape: f32[1,16], index: 2, kind: input, shape index: {}]   ;;  %s608_s3 = inlined_call_operand.vmem [shape: f32[128,16], index: 3, kind: output, shape index: {}]  }
   0x1   :  { %v30_v0 = vld [vmem:[%s605_s1] sm:$0xff]  ;;  %v31_v1 = vld [vmem:[%s605_s1 + $0x8] sm:$0xff]  ;;  %v32_v2 = vld [vmem:[%s605_s1 + $0x10] sm:$0xff] }
   0x2   :  { %v356_v3 = vpack.c.bf16 %v31_v1, %v30_v0  ;;  %v33_v4 = vld [vmem:[%s605_s1 + $0x18] sm:$0xff]  ;;  %v34_v6 = vld [vmem:[%s605_s1 + $0x20] sm:$0xff]  ;;  %v35_v7 = vld [vmem:[%s605_s1 + $0x28] sm:$0xff] }
   0x3   :  { %v360_v5 = vpack.c.bf16 %v33_v4, %v32_v2  ;;  %v364_v8 = vpack.c.bf16 %v35_v7, %v34_v6  ;;  %v14_v9 = vld [vmem:[%s606_s0] sm:$0xff]  ;;  %v36_v11 = vld [vmem:[%s605_s1 + $0x30] sm:$0xff]  ;;  %v37_v12 = vld [vmem:[%s605_s1 + $0x38] sm:$0xff] }
   0x4   :  { %357 = vmatprep.subr.bf16.mxu0 %v356_v3  ;;  %388 = vmatprep.subr.bf16.mxu1 %v356_v3  ;;  %v22_v10 = vld [vmem:[%s606_s0 + $0x40] sm:$0xff]  ;;  %v368_v13 = vpack.c.bf16 %v37_v12, %v36_v11  ;;  %v39_v15 = vld [vmem:[%s605_s1 + $0x48] sm:$0xff]  ;;  %v40_v17 = vld [vmem:[%s605_s1 + $0x50] sm:$0xff] }
   0x5   :  { %359 = vmatpush3.bf16.msra.mxu0 %v356_v3  ;;  %396 = vmatpush3.bf16.msra.mxu1 %v356_v3  ;;  %v38_v14 = vld [vmem:[%s605_s1 + $0x40] sm:$0xff]  ;;  %v41_v18 = vld [vmem:[%s605_s1 + $0x58] sm:$0xff]  ;;  %v43_v21 = vld [vmem:[%s605_s1 + $0x68] sm:$0xff] }
   0x6   :  { %361 = vmatprep.subr.bf16.mxu0 %v360_v5  ;;  %389 = vmatprep.subr.bf16.mxu1 %v360_v5  ;;  %v372_v16 = vpack.c.bf16 %v39_v15, %v38_v14  ;;  %v376_v19 = vpack.c.bf16 %v41_v18, %v40_v17  ;;  %v42_v20 = vld [vmem:[%s605_s1 + $0x60] sm:$0xff]  ;;  %v44_v23 = vld [vmem:[%s605_s1 + $0x70] sm:$0xff]  ;;  %v45_v24 = vld [vmem:[%s605_s1 + $0x78] sm:$0xff] }
   0x7   :  { %332 = vmatprep.mubr.f32.mxu0 %v14_v9  ;;  %344 = vmatprep.mubr.f32.mxu1 %v22_v10  ;;  %v380_v22 = vpack.c.bf16 %v43_v21, %v42_v20  ;;  %v384_v25 = vpack.c.bf16 %v45_v24, %v44_v23  ;;  %v15_v26 = vld [vmem:[%s606_s0 + $0x8] sm:$0xff]  ;;  %v16_v28 = vld [vmem:[%s606_s0 + $0x10] sm:$0xff]  ;;  %v17_v30 = vld [vmem:[%s606_s0 + $0x18] sm:$0xff] }
   0x8   :  { %v23_v27 = vld [vmem:[%s606_s0 + $0x48] sm:$0xff]  ;;  %v24_v29 = vld [vmem:[%s606_s0 + $0x50] sm:$0xff]  ;;  %v25_v31 = vld [vmem:[%s606_s0 + $0x58] sm:$0xff] }
   0x9   :  { %363 = vmatpush3.bf16.msra.mxu0 %v360_v5  ;;  %397 = vmatpush3.bf16.msra.mxu1 %v360_v5  ;;  %v18_v32 = vld [vmem:[%s606_s0 + $0x20] sm:$0xff]  ;;  %v19_v34 = vld [vmem:[%s606_s0 + $0x28] sm:$0xff]  ;;  %v20_v36 = vld [vmem:[%s606_s0 + $0x30] sm:$0xff] }
   0xa   :  { %365 = vmatprep.subr.bf16.mxu0 %v364_v8  ;;  %390 = vmatprep.subr.bf16.mxu1 %v364_v8  ;;  %v26_v33 = vld [vmem:[%s606_s0 + $0x60] sm:$0xff]  ;;  %v27_v35 = vld [vmem:[%s606_s0 + $0x68] sm:$0xff]  ;;  %v28_v37 = vld [vmem:[%s606_s0 + $0x70] sm:$0xff] }
   0xb   :  { %v21_v38 = vld [vmem:[%s606_s0 + $0x38] sm:$0xff]  ;;  %v523_v40 = vld [vmem:[%s607_s2] ss:$0 sm:$0xff] }
   0xc   :  { %v29_v39 = vld [vmem:[%s606_s0 + $0x78] sm:$0xff] }
   0xd   :  { %367 = vmatpush3.bf16.msra.mxu0 %v364_v8  ;;  %398 = vmatpush3.bf16.msra.mxu1 %v364_v8 }
   0xe   :  { %369 = vmatprep.subr.bf16.mxu0 %v368_v13  ;;  %391 = vmatprep.subr.bf16.mxu1 %v368_v13 }
  0x11   :  { %371 = vmatpush3.bf16.msra.mxu0 %v368_v13  ;;  %399 = vmatpush3.bf16.msra.mxu1 %v368_v13 }
  0x12   :  { %373 = vmatprep.subr.bf16.mxu0 %v372_v16  ;;  %392 = vmatprep.subr.bf16.mxu1 %v372_v16 }
  0x15   :  { %375 = vmatpush3.bf16.msra.mxu0 %v372_v16  ;;  %400 = vmatpush3.bf16.msra.mxu1 %v372_v16 }
  0x16   :  { %377 = vmatprep.subr.bf16.mxu0 %v376_v19  ;;  %393 = vmatprep.subr.bf16.mxu1 %v376_v19 }
  0x19   :  { %379 = vmatpush3.bf16.msra.mxu0 %v376_v19  ;;  %401 = vmatpush3.bf16.msra.mxu1 %v376_v19 }
  0x1a   :  { %381 = vmatprep.subr.bf16.mxu0 %v380_v22  ;;  %394 = vmatprep.subr.bf16.mxu1 %v380_v22 }
  0x1d   :  { %383 = vmatpush3.bf16.msra.mxu0 %v380_v22  ;;  %402 = vmatpush3.bf16.msra.mxu1 %v380_v22 }
  0x1e   :  { %385 = vmatprep.subr.bf16.mxu0 %v384_v25  ;;  %395 = vmatprep.subr.bf16.mxu1 %v384_v25 }
  0x21   :  { %387 = vmatpush3.bf16.msra.mxu0 %v384_v25  ;;  %403 = vmatpush3.bf16.msra.mxu1 %v384_v25 }
  0x24   :  { %333 = vmatmul.mubr.f32.vlgmr.msra.gmra.mrb[0].mxu0 %v15_v26  ;;  %345 = vmatmul.mubr.f32.vlgmr.msra.gmra.mrb[0].mxu1 %v23_v27 }
  0x25   :  { %335 = vmatprep.mubr.f32.mxu0 %v16_v28  ;;  %347 = vmatprep.mubr.f32.mxu1 %v24_v29 }
  0x28   :  { %336 = vmatmul.mubr.f32.gmra.mrb[2].mxu0 %v17_v30  ;;  %348 = vmatmul.mubr.f32.gmra.mrb[2].mxu1 %v25_v31 }
  0x29   :  { %338 = vmatprep.mubr.f32.mxu0 %v18_v32  ;;  %350 = vmatprep.mubr.f32.mxu1 %v26_v33 }
  0x2c   :  { %339 = vmatmul.mubr.f32.gmra.mrb[4].mxu0 %v19_v34  ;;  %351 = vmatmul.mubr.f32.gmra.mrb[4].mxu1 %v27_v35 }
  0x2d   :  { %341 = vmatprep.mubr.f32.mxu0 %v20_v36  ;;  %353 = vmatprep.mubr.f32.mxu1 %v28_v37 }
  0x30   :  { %342 = vmatmul.mubr.f32.gmra.mrb[6].mxu0 %v21_v38  ;;  %354 = vmatmul.mubr.f32.gmra.mrb[6].mxu1 %v29_v39 }
  0xf7   :  { %v334_v41 = vpop.f32.mrb[0].mxu0  ;;  %v346_v42 = vpop.f32.mrb[0].mxu1 }
  0xf8   :  { %v125_v43 = vadd.f32 %v334_v41, %v523_v40  ;;  %v165_v44 = vadd.f32 %v346_v42, %v523_v40  ;;  %v119_v45 = vpop.f32.mrb[1].mxu0  ;;  %v159_v46 = vpop.f32.mrb[1].mxu1 }
  0xf9   :  { %v120_v47 = vadd.f32 %v523_v40, %v119_v45  ;;  %v160_v48 = vadd.f32 %v523_v40, %v159_v46 }
  0xfa   :  { %vm199_vm1 = vcmp.ge.f32.partialorder %v125_v43, 0.0  ;;  %v215_v49 = vmul.f32 0.2, %v125_v43  ;;  %vm207_vm2 = vcmp.ge.f32.partialorder %v165_v44, 0.0  ;;  %v223_v50 = vmul.f32 0.2, %v165_v44 }
  0xfb   :  { %vm198_vm3 = vcmp.ge.f32.partialorder %v120_v47, 0.0  ;;  %v214_v51 = vmul.f32 0.2, %v120_v47  ;;  %vm206_vm4 = vcmp.ge.f32.partialorder %v160_v48, 0.0  ;;  %v222_v52 = vmul.f32 0.2, %v160_v48 }
  0xfc   :  { %v231_v53 = vsel %vm199_vm1, %v125_v43, %v215_v49  ;;  %v239_v54 = vsel %vm207_vm2, %v165_v44, %v223_v50  ;;  %v337_v55 = vpop.f32.mrb[2].mxu0  ;;  %v349_v56 = vpop.f32.mrb[2].mxu1 }
  0xfd   :  { %248 = vst.msk [vmem:[%s608_s3 + $0x8] sm:$0xff] %vm246_vm0, %v231_v53  ;;  %256 = vst.msk [vmem:[%s608_s3 + $0x48] sm:$0xff] %vm246_vm0, %v239_v54  ;;  %v230_v57 = vsel %vm198_vm3, %v120_v47, %v214_v51  ;;  %v238_v58 = vsel %vm206_vm4, %v160_v48, %v222_v52  ;;  %v135_v59 = vadd.f32 %v337_v55, %v523_v40  ;;  %v129_v61 = vpop.f32.mrb[3].mxu0  ;;  %v169_v62 = vpop.f32.mrb[3].mxu1 }
  0xfe   :  { %v175_v60 = vadd.f32 %v349_v56, %v523_v40  ;;  %247 = vst.msk [vmem:[%s608_s3] sm:$0xff] %vm246_vm0, %v230_v57  ;;  %255 = vst.msk [vmem:[%s608_s3 + $0x40] sm:$0xff] %vm246_vm0, %v238_v58  ;;  %v130_v63 = vadd.f32 %v523_v40, %v129_v61  ;;  %v170_v0 = vadd.f32 %v523_v40, %v169_v62 }
  0xff   :  { %vm201_vm5 = vcmp.ge.f32.partialorder %v135_v59, 0.0  ;;  %v217_v1 = vmul.f32 0.2, %v135_v59  ;;  %v340_v7 = vpop.f32.mrb[4].mxu0  ;;  %v352_v8 = vpop.f32.mrb[4].mxu1 }
 0x100   :  { %vm209_vm6 = vcmp.ge.f32.partialorder %v175_v60, 0.0  ;;  %v225_v2 = vmul.f32 0.2, %v175_v60  ;;  %vm200_vm7 = vcmp.ge.f32.partialorder %v130_v63, 0.0  ;;  %v216_v3 = vmul.f32 0.2, %v130_v63 }
 0x101   :  { %vm208_vm8 = vcmp.ge.f32.partialorder %v170_v0, 0.0  ;;  %v224_v4 = vmul.f32 0.2, %v170_v0  ;;  %v233_v5 = vsel %vm201_vm5, %v135_v59, %v217_v1  ;;  %v145_v11 = vadd.f32 %v340_v7, %v523_v40  ;;  %v139_v13 = vpop.f32.mrb[5].mxu0  ;;  %v179_v14 = vpop.f32.mrb[5].mxu1 }
 0x102   :  { %v241_v6 = vsel %vm209_vm6, %v175_v60, %v225_v2  ;;  %250 = vst.msk [vmem:[%s608_s3 + $0x18] sm:$0xff] %vm246_vm0, %v233_v5  ;;  %v232_v9 = vsel %vm200_vm7, %v130_v63, %v216_v3  ;;  %v185_v12 = vadd.f32 %v352_v8, %v523_v40  ;;  %v140_v15 = vadd.f32 %v523_v40, %v139_v13 }
 0x103   :  { %258 = vst.msk [vmem:[%s608_s3 + $0x58] sm:$0xff] %vm246_vm0, %v241_v6  ;;  %v240_v10 = vsel %vm208_vm8, %v170_v0, %v224_v4  ;;  %249 = vst.msk [vmem:[%s608_s3 + $0x10] sm:$0xff] %vm246_vm0, %v232_v9  ;;  %v180_v16 = vadd.f32 %v523_v40, %v179_v14  ;;  %v343_v17 = vpop.f32.mrb[6].mxu0  ;;  %v355_v18 = vpop.f32.mrb[6].mxu1  ;;  %vm203_vm9 = vcmp.ge.f32.partialorder %v145_v11, 0.0 }
 0x104   :  { %257 = vst.msk [vmem:[%s608_s3 + $0x50] sm:$0xff] %vm246_vm0, %v240_v10  ;;  %v219_v19 = vmul.f32 0.2, %v145_v11  ;;  %vm211_vm10 = vcmp.ge.f32.partialorder %v185_v12, 0.0  ;;  %v227_v20 = vmul.f32 0.2, %v185_v12  ;;  %v155_v25 = vadd.f32 %v343_v17, %v523_v40 }
 0x105   :  { %vm202_vm11 = vcmp.ge.f32.partialorder %v140_v15, 0.0  ;;  %v218_v21 = vmul.f32 0.2, %v140_v15  ;;  %vm210_vm12 = vcmp.ge.f32.partialorder %v180_v16, 0.0  ;;  %v226_v22 = vmul.f32 0.2, %v180_v16 }
 0x106   :  { %v235_v23 = vsel %vm203_vm9, %v145_v11, %v219_v19  ;;  %v243_v24 = vsel %vm211_vm10, %v185_v12, %v227_v20  ;;  %v195_v26 = vadd.f32 %v355_v18, %v523_v40  ;;  %v149_v27 = vpop.f32.mrb[7].mxu0  ;;  %v189_v28 = vpop.f32.mrb[7].mxu1  ;;  %vm205_vm13 = vcmp.ge.f32.partialorder %v155_v25, 0.0 }
 0x107   :  { %252 = vst.msk [vmem:[%s608_s3 + $0x28] sm:$0xff] %vm246_vm0, %v235_v23  ;;  %260 = vst.msk [vmem:[%s608_s3 + $0x68] sm:$0xff] %vm246_vm0, %v243_v24  ;;  %v234_v29 = vsel %vm202_vm11, %v140_v15, %v218_v21  ;;  %v242_v30 = vsel %vm210_vm12, %v180_v16, %v226_v22  ;;  %v150_v31 = vadd.f32 %v523_v40, %v149_v27  ;;  %v221_v33 = vmul.f32 0.2, %v155_v25 }
 0x108   :  { %v190_v32 = vadd.f32 %v523_v40, %v189_v28  ;;  %251 = vst.msk [vmem:[%s608_s3 + $0x20] sm:$0xff] %vm246_vm0, %v234_v29  ;;  %259 = vst.msk [vmem:[%s608_s3 + $0x60] sm:$0xff] %vm246_vm0, %v242_v30  ;;  %vm213_vm14 = vcmp.ge.f32.partialorder %v195_v26, 0.0  ;;  %v229_v34 = vmul.f32 0.2, %v195_v26 }
 0x109   :  { %vm204_vm15 = vcmp.ge.f32.partialorder %v150_v31, 0.0  ;;  %v220_v35 = vmul.f32 0.2, %v150_v31  ;;  %v237_v37 = vsel %vm205_vm13, %v155_v25, %v221_v33 }
 0x10a   :  { %vm212_vm1 = vcmp.ge.f32.partialorder %v190_v32, 0.0  ;;  %v228_v36 = vmul.f32 0.2, %v190_v32  ;;  %v245_v38 = vsel %vm213_vm14, %v195_v26, %v229_v34  ;;  %254 = vst.msk [vmem:[%s608_s3 + $0x38] sm:$0xff] %vm246_vm0, %v237_v37 }
 0x10b   :  { %262 = vst.msk [vmem:[%s608_s3 + $0x78] sm:$0xff] %vm246_vm0, %v245_v38  ;;  %v236_v39 = vsel %vm204_vm15, %v150_v31, %v220_v35 }
 0x10c   :  { %v244_v40 = vsel %vm212_vm1, %v190_v32, %v228_v36  ;;  %253 = vst.msk [vmem:[%s608_s3 + $0x30] sm:$0xff] %vm246_vm0, %v236_v39 }
 0x10d   :  { %261 = vst.msk [vmem:[%s608_s3 + $0x70] sm:$0xff] %vm246_vm0, %v244_v40 }

// kernel: cnn_forward.6
= control target key start
LH: loop header
LB: loop body
LE: loop exit
PB: predicated region body
PF: predicated region fallthrough
CT: control target
= control target key end

     0   :  { %vm158_vm0 = vcmask 261120   ;;  %s419_s1 = inlined_call_operand.vmem [shape: f32[256,32], index: 1, kind: input, shape index: {}]   ;;  %s420_s0 = inlined_call_operand.vmem [shape: f32[32,256], index: 0, kind: input, shape index: {}]   ;;  %s421_s2 = inlined_call_operand.vmem [shape: f32[1,32], index: 2, kind: input, shape index: {}]   ;;  %s422_s3 = inlined_call_operand.vmem [shape: f32[32,32], index: 3, kind: output, shape index: {}]  }
   0x1   :  { %v38_v0 = vld [vmem:[%s419_s1 + $0x80] sm:$0xff]  ;;  %v39_v1 = vld [vmem:[%s419_s1 + $0x88] sm:$0xff]  ;;  %v40_v5 = vld [vmem:[%s419_s1 + $0x90] sm:$0xff] }
   0x2   :  { %v22_v2 = vld [vmem:[%s419_s1] sm:$0xff]  ;;  %v212_v3 = vpack.c.bf16 %v39_v1, %v38_v0  ;;  %v23_v4 = vld [vmem:[%s419_s1 + $0x8] sm:$0xff]  ;;  %v41_v6 = vld [vmem:[%s419_s1 + $0x98] sm:$0xff] }
   0x3   :  { %v214_v7 = vpack.c.bf16 %v23_v4, %v22_v2  ;;  %v216_v8 = vpack.c.bf16 %v41_v6, %v40_v5  ;;  %v24_v9 = vld [vmem:[%s419_s1 + $0x10] sm:$0xff]  ;;  %v25_v10 = vld [vmem:[%s419_s1 + $0x18] sm:$0xff]  ;;  %v42_v11 = vld [vmem:[%s419_s1 + $0xa0] sm:$0xff] }
   0x4   :  { %213 = vmatprep.subr.bf16.mxu0 %v212_v3  ;;  %244 = vmatprep.subr.bf16.mxu1 %v212_v3  ;;  %v43_v12 = vld [vmem:[%s419_s1 + $0xa8] sm:$0xff]  ;;  %v218_v13 = vpack.c.bf16 %v25_v10, %v24_v9  ;;  %v26_v15 = vld [vmem:[%s419_s1 + $0x20] sm:$0xff]  ;;  %v44_v17 = vld [vmem:[%s419_s1 + $0xb0] sm:$0xff] }
   0x5   :  { %215 = vmatpush3.bf16.msra.mxu0 %v214_v7  ;;  %252 = vmatpush3.bf16.msra.mxu1 %v214_v7  ;;  %v220_v14 = vpack.c.bf16 %v43_v12, %v42_v11  ;;  %v27_v16 = vld [vmem:[%s419_s1 + $0x28] sm:$0xff]  ;;  %v45_v18 = vld [vmem:[%s419_s1 + $0xb8] sm:$0xff]  ;;  %v28_v21 = vld [vmem:[%s419_s1 + $0x30] sm:$0xff] }
   0x6   :  { %217 = vmatprep.subr.bf16.mxu0 %v216_v8  ;;  %245 = vmatprep.subr.bf16.mxu1 %v216_v8  ;;  %v222_v19 = vpack.c.bf16 %v27_v16, %v26_v15  ;;  %v224_v20 = vpack.c.bf16 %v45_v18, %v44_v17  ;;  %v29_v22 = vld [vmem:[%s419_s1 + $0x38] sm:$0xff]  ;;  %v46_v23 = vld [vmem:[%s419_s1 + $0xc0] sm:$0xff]  ;;  %v47_v24 = vld [vmem:[%s419_s1 + $0xc8] sm:$0xff] }
   0x7   :  { %v15_v25 = vld [vmem:[%s420_s0 + $0x8] sm:$0xff]  ;;  %v226_v27 = vpack.c.bf16 %v29_v22, %v28_v21  ;;  %v228_v28 = vpack.c.bf16 %v47_v24, %v46_v23  ;;  %v30_v29 = vld [vmem:[%s419_s1 + $0x40] sm:$0xff]  ;;  %v48_v31 = vld [vmem:[%s419_s1 + $0xd0] sm:$0xff] }
   0x8   :  { %125 = vmatprep.mubr.f32.mxu0 %v15_v25  ;;  %v19_v26 = vld [vmem:[%s420_s0 + $0x28] sm:$0xff]  ;;  %v49_v32 = vld [vmem:[%s419_s1 + $0xd8] sm:$0xff]  ;;  %v32_v35 = vld [vmem:[%s419_s1 + $0x50] sm:$0xff] }
   0x9   :  { %219 = vmatpush3.bf16.msra.mxu0 %v218_v13  ;;  %253 = vmatpush3.bf16.msra.mxu1 %v218_v13  ;;  %v31_v30 = vld [vmem:[%s419_s1 + $0x48] sm:$0xff]  ;;  %v232_v34 = vpack.c.bf16 %v49_v32, %v48_v31  ;;  %v33_v36 = vld [vmem:[%s419_s1 + $0x58] sm:$0xff]  ;;  %v50_v37 = vld [vmem:[%s419_s1 + $0xe0] sm:$0xff] }
   0xa   :  { %221 = vmatprep.subr.bf16.mxu0 %v220_v14  ;;  %246 = vmatprep.subr.bf16.mxu1 %v220_v14  ;;  %v230_v33 = vpack.c.bf16 %v31_v30, %v30_v29  ;;  %v51_v38 = vld [vmem:[%s419_s1 + $0xe8] sm:$0xff]  ;;  %v234_v39 = vpack.c.bf16 %v33_v36, %v32_v35  ;;  %v34_v41 = vld [vmem:[%s419_s1 + $0x60] sm:$0xff]  ;;  %v52_v43 = vld [vmem:[%s419_s1 + $0xf0] sm:$0xff] }
   0xb   :  { %135 = vmatprep.mubr.f32.mxu1 %v19_v26  ;;  %v236_v40 = vpack.c.bf16 %v51_v38, %v50_v37  ;;  %v35_v42 = vld [vmem:[%s419_s1 + $0x68] sm:$0xff]  ;;  %v53_v44 = vld [vmem:[%s419_s1 + $0xf8] sm:$0xff]  ;;  %v36_v47 = vld [vmem:[%s419_s1 + $0x70] sm:$0xff] }
   0xc   :  { %v238_v45 = vpack.c.bf16 %v35_v42, %v34_v41  ;;  %v240_v46 = vpack.c.bf16 %v53_v44, %v52_v43  ;;  %v37_v48 = vld [vmem:[%s419_s1 + $0x78] sm:$0xff]  ;;  %v14_v50 = vld [vmem:[%s420_s0] sm:$0xff]  ;;  %v16_v54 = vld [vmem:[%s420_s0 + $0x10] sm:$0xff] }
   0xd   :  { %223 = vmatpush3.bf16.msra.mxu0 %v222_v19  ;;  %254 = vmatpush3.bf16.msra.mxu1 %v222_v19  ;;  %v242_v49 = vpack.c.bf16 %v37_v48, %v36_v47  ;;  %v18_v51 = vld [vmem:[%s420_s0 + $0x20] sm:$0xff]  ;;  %v17_v52 = vld [vmem:[%s420_s0 + $0x18] sm:$0xff]  ;;  %v20_v55 = vld [vmem:[%s420_s0 + $0x30] sm:$0xff] }
   0xe   :  { %225 = vmatprep.subr.bf16.mxu0 %v224_v20  ;;  %247 = vmatprep.subr.bf16.mxu1 %v224_v20  ;;  %v21_v53 = vld [vmem:[%s420_s0 + $0x38] sm:$0xff]  ;;  %v167_v58 = vld [vmem:[%s421_s2] ss:$0 sm:$0xff] }
  0x11   :  { %227 = vmatpush3.bf16.msra.mxu0 %v226_v27  ;;  %255 = vmatpush3.bf16.msra.mxu1 %v226_v27 }
  0x12   :  { %229 = vmatprep.subr.bf16.mxu0 %v228_v28  ;;  %248 = vmatprep.subr.bf16.mxu1 %v228_v28 }
  0x15   :  { %231 = vmatpush3.bf16.msra.mxu0 %v230_v33  ;;  %256 = vmatpush3.bf16.msra.mxu1 %v230_v33 }
  0x16   :  { %233 = vmatprep.subr.bf16.mxu0 %v232_v34  ;;  %249 = vmatprep.subr.bf16.mxu1 %v232_v34 }
  0x19   :  { %235 = vmatpush3.bf16.msra.mxu0 %v234_v39  ;;  %257 = vmatpush3.bf16.msra.mxu1 %v234_v39 }
  0x1a   :  { %237 = vmatprep.subr.bf16.mxu0 %v236_v40  ;;  %250 = vmatprep.subr.bf16.mxu1 %v236_v40 }
  0x1d   :  { %239 = vmatpush3.bf16.msra.mxu0 %v238_v45  ;;  %258 = vmatpush3.bf16.msra.mxu1 %v238_v45 }
  0x1e   :  { %241 = vmatprep.subr.bf16.mxu0 %v240_v46  ;;  %251 = vmatprep.subr.bf16.mxu1 %v240_v46 }
  0x21   :  { %243 = vmatpush3.bf16.msra.mxu0 %v242_v49  ;;  %259 = vmatpush3.bf16.msra.mxu1 %v242_v49 }
  0x24   :  { %126 = vmatmul.mubr.f32.vlgmr.msra.gmra.mrb[0].mxu0 %v14_v50  ;;  %136 = vmatmul.mubr.f32.vlgmr.msra.gmra.mrb[0].mxu1 %v18_v51 }
  0x25   :  { %130 = vmatprep.mubr.f32.mxu0 %v17_v52  ;;  %140 = vmatprep.mubr.f32.mxu1 %v21_v53 }
  0x28   :  { %131 = vmatmul.mubr.f32.gmra.mrb[2].mxu0 %v16_v54  ;;  %141 = vmatmul.mubr.f32.gmra.mrb[2].mxu1 %v20_v55 }
  0xf7   :  { %v200_v56 = vpop.f32.mrb[0].mxu0  ;;  %v206_v57 = vpop.f32.mrb[0].mxu1 }
  0xf8   :  { %v201_v59 = vpop.f32.mrb[1].mxu0  ;;  %v207_v60 = vpop.f32.mrb[1].mxu1 }
  0xf9   :  { %v202_v61 = vadd.f32 %v201_v59, %v200_v56  ;;  %v208_v62 = vadd.f32 %v207_v60, %v206_v57 }
  0xfb   :  { %v128_v63 = vadd.f32 %v202_v61, %v167_v58  ;;  %v138_v0 = vadd.f32 %v208_v62, %v167_v58  ;;  %v203_v1 = vpop.f32.mrb[2].mxu0  ;;  %v209_v2 = vpop.f32.mrb[2].mxu1 }
  0xfc   :  { %v204_v3 = vpop.f32.mrb[3].mxu0  ;;  %v210_v4 = vpop.f32.mrb[3].mxu1 }
  0xfd   :  { %vm146_vm1 = vcmp.ge.f32.partialorder %v128_v63, 0.0  ;;  %v150_v5 = vmul.f32 0.2, %v128_v63  ;;  %vm148_vm2 = vcmp.ge.f32.partialorder %v138_v0, 0.0  ;;  %v152_v6 = vmul.f32 0.2, %v138_v0 }
  0xfe   :  { %v205_v7 = vadd.f32 %v204_v3, %v203_v1  ;;  %v211_v8 = vadd.f32 %v210_v4, %v209_v2 }
  0xff   :  { %v154_v9 = vsel %vm146_vm1, %v128_v63, %v150_v5  ;;  %v156_v10 = vsel %vm148_vm2, %v138_v0, %v152_v6 }
 0x100   :  { %159 = vst.msk [vmem:[%s422_s3] sm:$0xff] %vm158_vm0, %v154_v9  ;;  %161 = vst.msk [vmem:[%s422_s3 + $0x10] sm:$0xff] %vm158_vm0, %v156_v10  ;;  %v133_v11 = vadd.f32 %v205_v7, %v167_v58  ;;  %v143_v12 = vadd.f32 %v211_v8, %v167_v58 }
 0x102   :  { %vm147_vm3 = vcmp.ge.f32.partialorder %v133_v11, 0.0  ;;  %v151_v13 = vmul.f32 0.2, %v133_v11  ;;  %vm149_vm4 = vcmp.ge.f32.partialorder %v143_v12, 0.0  ;;  %v153_v14 = vmul.f32 0.2, %v143_v12 }
 0x104   :  { %v155_v15 = vsel %vm147_vm3, %v133_v11, %v151_v13  ;;  %v157_v16 = vsel %vm149_vm4, %v143_v12, %v153_v14 }
 0x105   :  { %160 = vst.msk [vmem:[%s422_s3 + $0x8] sm:$0xff] %vm158_vm0, %v155_v15  ;;  %162 = vst.msk [vmem:[%s422_s3 + $0x18] sm:$0xff] %vm158_vm0, %v157_v16 }

// kernel: cnn_forward.7
= control target key start
LH: loop header
LB: loop body
LE: loop exit
PB: predicated region body
PF: predicated region fallthrough
CT: control target
= control target key end

     0   :  { %s1445_s0 = inlined_call_operand.vmem [shape: f32[8,512], index: 0, kind: input, shape index: {}]   ;;  %s1446_s1 = inlined_call_operand.vmem [shape: f32[512,64], index: 1, kind: input, shape index: {}]   ;;  %s1447_s2 = inlined_call_operand.vmem [shape: f32[1,64], index: 2, kind: input, shape index: {}]   ;;  %s1448_s3 = inlined_call_operand.vmem [shape: f32[256,32], index: 3, kind: input, shape index: {}]   ;;  %s1449_s4 = inlined_call_operand.vmem [shape: f32[1,32], index: 4, kind: input, shape index: {}]   ;;  %s1450_s5 = inlined_call_operand.vmem [shape: f32[32,2], index: 5, kind: input, shape index: {}]   ;;  %s1451_s6 = inlined_call_operand.vmem [shape: f32[1,2], index: 6, kind: input, shape index: {}]   ;;  %s1452_s7 = inlined_call_operand.hbm [shape: f32[2,2], index: 7, kind: output, shape index: {}]  }
   0x1   :  { %v47_v0 = vld [vmem:[%s1446_s1 + $0x80] sm:$0xff]  ;;  %v48_v1 = vld [vmem:[%s1446_s1 + $0x88] sm:$0xff]  ;;  %v49_v11 = vld [vmem:[%s1446_s1 + $0x90] sm:$0xff] }
   0x2   :  { %v31_v2 = vld [vmem:[%s1446_s1] sm:$0xff]  ;;  %v890_v3 = vpack.c.bf16 %v48_v1, %v47_v0  ;;  %v32_v4 = vld [vmem:[%s1446_s1 + $0x8] sm:$0xff]  ;;  %v50_v13 = vld [vmem:[%s1446_s1 + $0x98] sm:$0xff] }
   0x3   :  { %v79_v5 = vld [vmem:[%s1446_s1 + $0x180] sm:$0xff]  ;;  %v80_v6 = vld [vmem:[%s1446_s1 + $0x188] sm:$0xff]  ;;  %v892_v7 = vpack.c.bf16 %v32_v4, %v31_v2  ;;  %v33_v14 = vld [vmem:[%s1446_s1 + $0x10] sm:$0xff]  ;;  %v894_v16 = vpack.c.bf16 %v50_v13, %v49_v11 }
   0x4   :  { %v922_v8 = vpack.c.bf16 %v80_v6, %v79_v5  ;;  %v63_v9 = vld [vmem:[%s1446_s1 + $0x100] sm:$0xff]  ;;  %v64_v10 = vld [vmem:[%s1446_s1 + $0x108] sm:$0xff]  ;;  %891 = vmatprep.subr.bf16.mxu0 %v890_v3  ;;  %v34_v15 = vld [vmem:[%s1446_s1 + $0x18] sm:$0xff] }
   0x5   :  { %v924_v12 = vpack.c.bf16 %v64_v10, %v63_v9  ;;  %893 = vmatpush3.bf16.msra.mxu0 %v892_v7  ;;  %v896_v17 = vpack.c.bf16 %v34_v15, %v33_v14  ;;  %v81_v18 = vld [vmem:[%s1446_s1 + $0x190] sm:$0xff]  ;;  %v82_v19 = vld [vmem:[%s1446_s1 + $0x198] sm:$0xff]  ;;  %v51_v23 = vld [vmem:[%s1446_s1 + $0xa0] sm:$0xff] }
   0x6   :  { %923 = vmatprep.subr.bf16.mxu1 %v922_v8  ;;  %v65_v20 = vld [vmem:[%s1446_s1 + $0x110] sm:$0xff]  ;;  %v926_v21 = vpack.c.bf16 %v82_v19, %v81_v18  ;;  %v66_v22 = vld [vmem:[%s1446_s1 + $0x118] sm:$0xff]  ;;  %v52_v24 = vld [vmem:[%s1446_s1 + $0xa8] sm:$0xff]  ;;  %895 = vmatprep.subr.bf16.mxu0 %v894_v16 }
   0x7   :  { %925 = vmatpush3.bf16.msra.mxu1 %v924_v12  ;;  %v928_v25 = vpack.c.bf16 %v66_v22, %v65_v20  ;;  %v898_v26 = vpack.c.bf16 %v52_v24, %v51_v23  ;;  %v35_v27 = vld [vmem:[%s1446_s1 + $0x20] sm:$0xff]  ;;  %v36_v28 = vld [vmem:[%s1446_s1 + $0x28] sm:$0xff]  ;;  %v53_v35 = vld [vmem:[%s1446_s1 + $0xb0] sm:$0xff] }
   0x8   :  { %v83_v29 = vld [vmem:[%s1446_s1 + $0x1a0] sm:$0xff]  ;;  %927 = vmatprep.subr.bf16.mxu1 %v926_v21  ;;  %v84_v30 = vld [vmem:[%s1446_s1 + $0x1a8] sm:$0xff]  ;;  %v900_v33 = vpack.c.bf16 %v36_v28, %v35_v27  ;;  %v54_v36 = vld [vmem:[%s1446_s1 + $0xb8] sm:$0xff] }
   0x9   :  { %v67_v31 = vld [vmem:[%s1446_s1 + $0x120] sm:$0xff]  ;;  %v68_v32 = vld [vmem:[%s1446_s1 + $0x128] sm:$0xff]  ;;  %897 = vmatpush3.bf16.msra.mxu0 %v896_v17  ;;  %v930_v34 = vpack.c.bf16 %v84_v30, %v83_v29  ;;  %v37_v37 = vld [vmem:[%s1446_s1 + $0x30] sm:$0xff]  ;;  %v902_v39 = vpack.c.bf16 %v54_v36, %v53_v35 }
   0xa   :  { %899 = vmatprep.subr.bf16.mxu0 %v898_v26  ;;  %v932_v38 = vpack.c.bf16 %v68_v32, %v67_v31  ;;  %v38_v40 = vld [vmem:[%s1446_s1 + $0x38] sm:$0xff]  ;;  %v85_v41 = vld [vmem:[%s1446_s1 + $0x1b0] sm:$0xff]  ;;  %v55_v46 = vld [vmem:[%s1446_s1 + $0xc0] sm:$0xff] }
   0xb   :  { %929 = vmatpush3.bf16.msra.mxu1 %v928_v25  ;;  %v86_v42 = vld [vmem:[%s1446_s1 + $0x1b8] sm:$0xff]  ;;  %v69_v44 = vld [vmem:[%s1446_s1 + $0x130] sm:$0xff]  ;;  %v56_v47 = vld [vmem:[%s1446_s1 + $0xc8] sm:$0xff]  ;;  %v904_v48 = vpack.c.bf16 %v38_v40, %v37_v37 }
   0xc   :  { %931 = vmatprep.subr.bf16.mxu1 %v930_v34  ;;  %v934_v43 = vpack.c.bf16 %v86_v42, %v85_v41  ;;  %v70_v45 = vld [vmem:[%s1446_s1 + $0x138] sm:$0xff]  ;;  %v87_v49 = vld [vmem:[%s1446_s1 + $0x1c0] sm:$0xff]  ;;  %v88_v50 = vld [vmem:[%s1446_s1 + $0x1c8] sm:$0xff]  ;;  %v906_v52 = vpack.c.bf16 %v56_v47, %v55_v46 }
   0xd   :  { %901 = vmatpush3.bf16.msra.mxu0 %v900_v33  ;;  %v936_v51 = vpack.c.bf16 %v70_v45, %v69_v44  ;;  %v39_v53 = vld [vmem:[%s1446_s1 + $0x40] sm:$0xff]  ;;  %v40_v54 = vld [vmem:[%s1446_s1 + $0x48] sm:$0xff]  ;;  %v938_v56 = vpack.c.bf16 %v88_v50, %v87_v49  ;;  %v57_v58 = vld [vmem:[%s1446_s1 + $0xd0] sm:$0xff] }
   0xe   :  { %903 = vmatprep.subr.bf16.mxu0 %v902_v39  ;;  %v71_v55 = vld [vmem:[%s1446_s1 + $0x140] sm:$0xff]  ;;  %v72_v57 = vld [vmem:[%s1446_s1 + $0x148] sm:$0xff]  ;;  %v58_v59 = vld [vmem:[%s1446_s1 + $0xd8] sm:$0xff]  ;;  %v908_v62 = vpack.c.bf16 %v40_v54, %v39_v53 }
   0xf   :  { %933 = vmatpush3.bf16.msra.mxu1 %v932_v38  ;;  %v89_v60 = vld [vmem:[%s1446_s1 + $0x1d0] sm:$0xff]  ;;  %v90_v61 = vld [vmem:[%s1446_s1 + $0x1d8] sm:$0xff]  ;;  %v940_v63 = vpack.c.bf16 %v72_v57, %v71_v55  ;;  %v910_v0 = vpack.c.bf16 %v58_v59, %v57_v58  ;;  %v59_v6 = vld [vmem:[%s1446_s1 + $0xe0] sm:$0xff] }
  0x10   :  { %935 = vmatprep.subr.bf16.mxu1 %v934_v43  ;;  %v41_v1 = vld [vmem:[%s1446_s1 + $0x50] sm:$0xff]  ;;  %v42_v2 = vld [vmem:[%s1446_s1 + $0x58] sm:$0xff]  ;;  %v942_v4 = vpack.c.bf16 %v90_v61, %v89_v60  ;;  %v60_v7 = vld [vmem:[%s1446_s1 + $0xe8] sm:$0xff] }
  0x11   :  { %905 = vmatpush3.bf16.msra.mxu0 %v904_v48  ;;  %v73_v3 = vld [vmem:[%s1446_s1 + $0x150] sm:$0xff]  ;;  %v74_v5 = vld [vmem:[%s1446_s1 + $0x158] sm:$0xff]  ;;  %v91_v8 = vld [vmem:[%s1446_s1 + $0x1e0] sm:$0xff]  ;;  %v912_v10 = vpack.c.bf16 %v42_v2, %v41_v1  ;;  %v914_v14 = vpack.c.bf16 %v60_v7, %v59_v6 }
  0x12   :  { %907 = vmatprep.subr.bf16.mxu0 %v906_v52  ;;  %v92_v9 = vld [vmem:[%s1446_s1 + $0x1e8] sm:$0xff]  ;;  %v43_v11 = vld [vmem:[%s1446_s1 + $0x60] sm:$0xff]  ;;  %v944_v13 = vpack.c.bf16 %v74_v5, %v73_v3  ;;  %v61_v19 = vld [vmem:[%s1446_s1 + $0xf0] sm:$0xff] }
  0x13   :  { %937 = vmatpush3.bf16.msra.mxu1 %v936_v51  ;;  %v44_v12 = vld [vmem:[%s1446_s1 + $0x68] sm:$0xff]  ;;  %v75_v15 = vld [vmem:[%s1446_s1 + $0x160] sm:$0xff]  ;;  %v946_v18 = vpack.c.bf16 %v92_v9, %v91_v8  ;;  %v62_v20 = vld [vmem:[%s1446_s1 + $0xf8] sm:$0xff] }
  0x14   :  { %939 = vmatprep.subr.bf16.mxu1 %v938_v56  ;;  %v76_v16 = vld [vmem:[%s1446_s1 + $0x168] sm:$0xff]  ;;  %v30_v21 = vld [vmem:[%s1445_s0 + $0x18] sm:$0xff]  ;;  %v93_v22 = vld [vmem:[%s1446_s1 + $0x1f0] sm:$0xff]  ;;  %v916_v24 = vpack.c.bf16 %v44_v12, %v43_v11 }
  0x15   :  { %909 = vmatpush3.bf16.msra.mxu0 %v908_v62  ;;  %v28_v17 = vld [vmem:[%s1445_s0 + $0x8] sm:$0xff]  ;;  %v94_v23 = vld [vmem:[%s1446_s1 + $0x1f8] sm:$0xff]  ;;  %236 = vmatprep.mubr.f32.mxu1 %v30_v21 }
  0x16   :  { %911 = vmatprep.subr.bf16.mxu0 %v910_v0  ;;  %166 = vmatprep.mubr.f32.mxu0 %v28_v17 }
  0x17   :  { %941 = vmatpush3.bf16.msra.mxu1 %v940_v63 }
  0x18   :  { %943 = vmatprep.subr.bf16.mxu1 %v942_v4 }
  0x19   :  { %913 = vmatpush3.bf16.msra.mxu0 %v912_v10 }
  0x1a   :  { %12 = vsyncpa [#allocation3], 0  ;;  %915 = vmatprep.subr.bf16.mxu0 %v914_v14  ;;  %v948_v25 = vpack.c.bf16 %v76_v16, %v75_v15  ;;  %v918_v26 = vpack.c.bf16 %v62_v20, %v61_v19  ;;  %v45_v27 = vld [vmem:[%s1446_s1 + $0x70] sm:$0xff]  ;;  %v46_v28 = vld [vmem:[%s1446_s1 + $0x78] sm:$0xff]  ;;  %v950_v29 = vpack.c.bf16 %v94_v23, %v93_v22  ;;  %v1036_v42 = vmov 0.0|0.0   ;;  %s1039_s21 = smov [#allocation2]  }
  0x1b   :  { %945 = vmatpush3.bf16.msra.mxu1 %v944_v13  ;;  %v77_v30 = vld [vmem:[%s1446_s1 + $0x170] sm:$0xff]  ;;  %v78_v31 = vld [vmem:[%s1446_s1 + $0x178] sm:$0xff]  ;;  %v920_v32 = vpack.c.bf16 %v46_v28, %v45_v27  ;;  %v253_v34 = vld [vmem:[%s1448_s3 + $0x40] sm:$0xff]  ;;  %vm1037_vm0 = vmmov 0   ;;  %v1038_v61 = vmov 0.0   ;;  %vm263_vm2 = vcmask 523264  }
  0x1c   :  { %947 = vmatprep.subr.bf16.mxu1 %v946_v18  ;;  %v952_v33 = vpack.c.bf16 %v78_v31, %v77_v30  ;;  %v254_v35 = vld [vmem:[%s1448_s3 + $0x48] sm:$0xff]  ;;  %v245_v36 = vld [vmem:[%s1448_s3] sm:$0xff]  ;;  %v29_v40 = vld [vmem:[%s1445_s0 + $0x10] sm:$0xff]  ;;  %vm594_vm4 = vcmask 261120   ;;  %s676_s22 = sshll.u32 %s1039_s21, 4  ;;  %vm668_vm5 = vcmask 9216   ;;  %s677_s22 = int_to_ptr.vmem [resolvable:$true] %s676_s22 }
  0x1d   :  { %917 = vmatpush3.bf16.msra.mxu0 %v916_v24  ;;  %v246_v37 = vld [vmem:[%s1448_s3 + $0x8] sm:$0xff]  ;;  %v27_v38 = vld [vmem:[%s1445_s0] sm:$0xff]  ;;  %v955_v39 = vpack.c.bf16 %v254_v35, %v253_v34  ;;  %v247_v43 = vld [vmem:[%s1448_s3 + $0x10] sm:$0xff]  ;;  %p1017_p1 = scmp.lt.s32.totalorder %s677_s22, %s677_s22 }
  0x1e   :  { %919 = vmatprep.subr.bf16.mxu0 %v918_v26  ;;  %v967_v41 = vpack.c.bf16 %v246_v37, %v245_v36  ;;  %v248_v44 = vld [vmem:[%s1448_s3 + $0x18] sm:$0xff]  ;;  %v255_v46 = vld [vmem:[%s1448_s3 + $0x50] sm:$0xff]  ;;  %v249_v49 = vld [vmem:[%s1448_s3 + $0x20] sm:$0xff] }
  0x1f   :  { %949 = vmatpush3.bf16.msra.mxu1 %v948_v25  ;;  %v970_v45 = vpack.c.bf16 %v248_v44, %v247_v43  ;;  %v256_v47 = vld [vmem:[%s1448_s3 + $0x58] sm:$0xff]  ;;  %v250_v50 = vld [vmem:[%s1448_s3 + $0x28] sm:$0xff]  ;;  %v257_v52 = vld [vmem:[%s1448_s3 + $0x60] sm:$0xff] }
  0x20   :  { %951 = vmatprep.subr.bf16.mxu1 %v950_v29  ;;  %v958_v48 = vpack.c.bf16 %v256_v47, %v255_v46  ;;  %v973_v51 = vpack.c.bf16 %v250_v50, %v249_v49  ;;  %v258_v53 = vld [vmem:[%s1448_s3 + $0x68] sm:$0xff]  ;;  %v251_v55 = vld [vmem:[%s1448_s3 + $0x30] sm:$0xff]  ;;  %v252_v56 = vld [vmem:[%s1448_s3 + $0x38] sm:$0xff] }
  0x21   :  { %921 = vmatpush3.bf16.msra.mxu0 %v920_v32  ;;  %v961_v54 = vpack.c.bf16 %v258_v53, %v257_v52  ;;  %v976_v57 = vpack.c.bf16 %v252_v56, %v251_v55  ;;  %v259_v58 = vld [vmem:[%s1448_s3 + $0x70] sm:$0xff]  ;;  %v260_v59 = vld [vmem:[%s1448_s3 + $0x78] sm:$0xff]  ;;  %v684_v63 = vld [vmem:[%s1447_s2] ss:$0 sm:$0xff] }
  0x22   :  { %954 = vmatprep.subr.bf16.mxu0 %v1036_v42  ;;  %v964_v60 = vpack.c.bf16 %v260_v59, %v259_v58  ;;  %v490_v6 = vld [vmem:[%s1448_s3 + $0xc0] sm:$0xff]  ;;  %v491_v7 = vld [vmem:[%s1448_s3 + $0xc8] sm:$0xff]  ;;  %v492_v13 = vld [vmem:[%s1448_s3 + $0xd0] sm:$0xff] }
  0x23   :  { %953 = vmatpush3.bf16.msra.mxu1 %v952_v33  ;;  %v408_v9 = vld [vmem:[%s1448_s3 + $0x80] sm:$0xff]  ;;  %v409_v10 = vld [vmem:[%s1448_s3 + $0x88] sm:$0xff]  ;;  %v991_v12 = vpack.c.bf16 %v491_v7, %v490_v6  ;;  %v493_v14 = vld [vmem:[%s1448_s3 + $0xd8] sm:$0xff] }
  0x24   :  { %966 = vmatprep.subr.bf16.mxu1 %v1036_v42  ;;  %167 = vmatmul.mubr.f32.vlgmr.msra.gmra.mrb[0].mxu0 %v27_v38  ;;  %v979_v16 = vpack.c.bf16 %v409_v10, %v408_v9  ;;  %v410_v18 = vld [vmem:[%s1448_s3 + $0x90] sm:$0xff]  ;;  %v411_v19 = vld [vmem:[%s1448_s3 + $0x98] sm:$0xff]  ;;  %v994_v20 = vpack.c.bf16 %v493_v14, %v492_v13  ;;  %v494_v21 = vld [vmem:[%s1448_s3 + $0xe0] sm:$0xff] }
  0x25   :  { %956 = vmatpush3.bf16.msra.mxu0 %v955_v39  ;;  %819 = vmatprep.mubr.msk.f32.mxu0 %vm1037_vm0, %v1038_v61  ;;  %v495_v22 = vld [vmem:[%s1448_s3 + $0xe8] sm:$0xff]  ;;  %v982_v23 = vpack.c.bf16 %v411_v19, %v410_v18  ;;  %v412_v24 = vld [vmem:[%s1448_s3 + $0xa0] sm:$0xff]  ;;  %v496_v27 = vld [vmem:[%s1448_s3 + $0xf0] sm:$0xff] }
  0x26   :  { %237 = vmatmul.mubr.f32.vlgmr.msra.gmra.mrb[0].mxu1 %v29_v40  ;;  %957 = vmatprep.subr.bf16.mxu0 %v1036_v42  ;;  %v413_v25 = vld [vmem:[%s1448_s3 + $0xa8] sm:$0xff]  ;;  %v997_v26 = vpack.c.bf16 %v495_v22, %v494_v21  ;;  %v497_v28 = vld [vmem:[%s1448_s3 + $0xf8] sm:$0xff]  ;;  %v414_v30 = vld [vmem:[%s1448_s3 + $0xb0] sm:$0xff] }
  0x27   :  { %968 = vmatpush3.bf16.msra.mxu1 %v967_v41  ;;  %838 = vmatprep.mubr.msk.f32.mxu1 %vm1037_vm0, %v1038_v61  ;;  %v985_v29 = vpack.c.bf16 %v413_v25, %v412_v24  ;;  %v415_v31 = vld [vmem:[%s1448_s3 + $0xb8] sm:$0xff]  ;;  %v1000_v32 = vpack.c.bf16 %v497_v28, %v496_v27  ;;  %v583_v36 = vld [vmem:[%s1450_s5] sm:$0xff]  ;;  %v584_v37 = vld [vmem:[%s1450_s5 + $0x8] sm:$0xff] }
  0x28   :  { %969 = vmatprep.subr.bf16.mxu1 %v1036_v42  ;;  %v988_v33 = vpack.c.bf16 %v415_v31, %v414_v30  ;;  %v1003_v38 = vpack.c.bf16 %v584_v37, %v583_v36  ;;  %v585_v39 = vld [vmem:[%s1450_s5 + $0x10] sm:$0xff]  ;;  %v586_v40 = vld [vmem:[%s1450_s5 + $0x18] sm:$0xff]  ;;  %v689_v52 = vld [vmem:[%s1449_s4] ss:$0 sm:$0xff]  ;;  %s1012_s4 = scalar_lea.vmem %s677_s22, 32 }
  0x29   :  { %959 = vmatpush3.bf16.msra.mxu0 %v958_v48  ;;  %v1006_v41 = vpack.c.bf16 %v586_v40, %v585_v39  ;;  %p1013_p0 = scmp.ne.s32.totalorder %s677_s22, %s1012_s4  ;;  %p1018_p2 = scmp.lt.s32.totalorder %s1012_s4, %s1012_s4 }
  0x2a   :  { %960 = vmatprep.subr.bf16.mxu0 %v1036_v42 }
  0x2b   :  { %971 = vmatpush3.bf16.msra.mxu1 %v970_v45  ;;  %p1019_p3 = por %p1018_p2, %p1017_p1 }
  0x2c   :  { %972 = vmatprep.subr.bf16.mxu1 %v1036_v42 }
  0x2d   :  { %962 = vmatpush3.bf16.msra.mxu0 %v961_v54  ;;  %p1020_p4 = pnand %p1019_p3, %p1013_p0 }
  0x2e   :  { %963 = vmatprep.subr.bf16.mxu0 %v1036_v42 }
  0x2f   :  { %974 = vmatpush3.bf16.msra.mxu1 %v973_v51 }
  0x30   :  { %975 = vmatprep.subr.bf16.mxu1 %v1036_v42 }
  0x31   :  { %965 = vmatpush3.bf16.msra.mxu0 %v964_v60 }
  0x32   :  { %978 = vmatprep.subr.bf16.mxu0 %v1036_v42 }
  0x33   :  { %977 = vmatpush3.bf16.msra.mxu1 %v976_v57  ;;  %v690_v57 = vld [vmem:[%s1451_s6] ss:$0 sm:$0xff] }
  0x34   :  { %990 = vmatprep.subr.bf16.mxu1 %v1036_v42 }
  0xf7   :  { %v724_v62 = vpop.f32.mrb[0].mxu0 }
  0xf8   :  { %v725_v0 = vpop.f32.mrb[1].mxu0 }
  0xf9   :  { %v759_v1 = vpop.f32.mrb[0].mxu1  ;;  %v726_v2 = vadd.f32 %v725_v0, %v724_v62 }
  0xfa   :  { %v760_v3 = vpop.f32.mrb[1].mxu1 }
  0xfb   :  { %v761_v4 = vadd.f32 %v760_v3, %v759_v1  ;;  %v169_v5 = vadd.f32 %v726_v2, %v684_v63 }
  0xfd   :  { %v239_v8 = vadd.f32 %v761_v4, %v169_v5 }
  0xff   :  { %vm242_vm1 = vcmp.ge.f32.partialorder %v239_v8, 0.0  ;;  %v243_v11 = vmul.f32 0.2, %v239_v8 }
 0x101   :  { %v244_v15 = vsel %vm242_vm1, %v239_v8, %v243_v11 }
 0x102   :  { %v262_v17 = vrot.slane %v244_v15, 2  ;;  %839 = vmatmul.mubr.msk.f32.vlgmr.msra.gmra.mrb[2].mxu1 %vm263_vm2, %v244_v15  ;;  %v498_v34 = vrot.slane %v244_v15, 6  ;;  %v416_v35 = vrot.slane %v244_v15, 4 }
 0x103   :  { %992 = vmatpush3.bf16.msra.mxu1 %v991_v12  ;;  %876 = vmatprep.mubr.msk.f32.mxu1 %vm1037_vm0, %v1038_v61 }
 0x104   :  { %820 = vmatmul.mubr.msk.f32.vlgmr.msra.gmra.mrb[2].mxu0 %vm263_vm2, %v262_v17  ;;  %993 = vmatprep.subr.bf16.mxu1 %v1036_v42 }
 0x105   :  { %980 = vmatpush3.bf16.msra.mxu0 %v979_v16  ;;  %857 = vmatprep.mubr.msk.f32.mxu0 %vm1037_vm0, %v1038_v61 }
 0x106   :  { %981 = vmatprep.subr.bf16.mxu0 %v1036_v42 }
 0x107   :  { %995 = vmatpush3.bf16.msra.mxu1 %v994_v20 }
 0x108   :  { %996 = vmatprep.subr.bf16.mxu1 %v1036_v42 }
 0x109   :  { %983 = vmatpush3.bf16.msra.mxu0 %v982_v23 }
 0x10a   :  { %984 = vmatprep.subr.bf16.mxu0 %v1036_v42 }
 0x10b   :  { %998 = vmatpush3.bf16.msra.mxu1 %v997_v26 }
 0x10c   :  { %999 = vmatprep.subr.bf16.mxu1 %v1036_v42 }
 0x10d   :  { %986 = vmatpush3.bf16.msra.mxu0 %v985_v29 }
 0x10e   :  { %987 = vmatprep.subr.bf16.mxu0 %v1036_v42 }
 0x10f   :  { %1001 = vmatpush3.bf16.msra.mxu1 %v1000_v32 }
 0x111   :  { %989 = vmatpush3.bf16.msra.mxu0 %v988_v33 }
 0x112   :  { %877 = vmatmul.mubr.msk.f32.vlgmr.msra.gmra.mrb[4].mxu1 %vm263_vm2, %v498_v34  ;;  %1002 = vmatprep.subr.bf16.mxu0 %v1036_v42 }
 0x114   :  { %858 = vmatmul.mubr.msk.f32.vlgmr.msra.gmra.mrb[4].mxu0 %vm263_vm2, %v416_v35 }
 0x115   :  { %887 = vmatprep.mubr.msk.f32.mxu0 %vm1037_vm0, %v1038_v61  ;;  %1004 = vmatpush3.bf16.msra.mxu0 %v1003_v38 }
 0x116   :  { %1005 = vmatprep.subr.bf16.mxu0 %v1036_v42 }
 0x119   :  { %1007 = vmatpush3.bf16.msra.mxu0 %v1006_v41 }
 0x1d5   :  { %v404_v43 = vpop.f32.mrb[2].mxu1 }
 0x1d6   :  { %v840_v44 = vpop.f32.mrb[3].mxu1 }
 0x1d7   :  { %v332_v45 = vpop.f32.mrb[2].mxu0 }
 0x1d8   :  { %v405_v46 = vadd.f32 %v404_v43, %v332_v45  ;;  %v821_v47 = vpop.f32.mrb[3].mxu0 }
 0x1e5   :  { %v567_v48 = vpop.f32.mrb[4].mxu1 }
 0x1e6   :  { %v878_v49 = vpop.f32.mrb[5].mxu1 }
 0x1e7   :  { %v485_v50 = vpop.f32.mrb[4].mxu0 }
 0x1e8   :  { %v489_v51 = vadd.f32 %v485_v50, %v405_v46  ;;  %v859_v42 = vpop.f32.mrb[5].mxu0 }
 0x1ea   :  { %v571_v53 = vadd.f32 %v567_v48, %v489_v51 }
 0x1ec   :  { %v579_v54 = vadd.f32 %v689_v52, %v571_v53 }
 0x1ee   :  { %v581_v55 = vmul.f32 0.01, %v579_v54  ;;  %vm580_vm3 = vcmp.ge.f32.partialorder %v579_v54, 0.0 }
 0x1f0   :  { %v582_v56 = vsel %vm580_vm3, %v579_v54, %v581_v55 }
 0x1f1   :  { %888 = vmatmul.mubr.msk.f32.vlgmr.msra.gmra.mrb[6].mxu0 %vm594_vm4, %v582_v56 }
 0x2c4   :  { %v664_v58 = vpop.f32.mrb[6].mxu0 }
 0x2c5   :  { %v665_v59 = vadd.f32 %v690_v57, %v664_v58  ;;  %v889_v60 = vpop.f32.mrb[7].mxu0 }
 0x2c7   :  { %669 = vst.msk [vmem:[#allocation2] sm:$0x3] %vm668_vm5, %v665_v59 }
 0x2c8   :  { %1023 = shalt.err (!%p1020_p4)
}
 0x2c9   :  { %s1024_s1 = scalar_lea.hbm %s1452_s7, 32 }
 0x2ca   :  { %p1025_p5 = scmp.ne.s32.totalorder %s1452_s7, %s1024_s1  ;;  %p1028_p6 = scmp.lt.u32.totalorder %s1024_s1, %s1452_s7 }
 0x2cc   :  { %p1030_p7 = pnand %p1028_p6, %p1025_p5 }
 0x2ce   :  { %1033 = shalt.err (!%p1030_p7)
}
 0x2cf   :  { %679 = dma.vmem_to_hbm [thread:$0]  %s677_s22, 32, %s1452_s7, [#allocation3]  }
 0x2d0   :  { %1034 = dma.done.wait [#allocation3], 32  }
 0x2d1   :  { %1035 = vsyncadd [#allocation3], 4294967264 }
 0x2d2   :  { %683 = vsyncpa [#allocation3], 1 }

</bundles_post_ra>
